<compile_context>
chip_gen: v7x
topology: tpu7x:2x2x1
jax: 0.10.0
libtpu: 0.0.40
codegen_flags: <defaults>
</compile_context>

<pallas_src>
import functools
import numpy as np

import jax
import jax.numpy as jnp
from jax.experimental import pallas as pl
from jax.experimental.pallas import tpu as pltpu


def _round_up(x, m):
    return (x + m - 1) // m * m


_VMEM_LIMIT = 48 * 1024 * 1024   # explicit budget: fits v7x's 64 MiB physical VMEM


# ----------------------------------------------------------------------------
# Kernel 1: K-resident tiled matmul + bias (+ReLU, + fused residual add).
# Used for every 1x1 conv, the downsample convs and the fused classifiers.
# ----------------------------------------------------------------------------
def _mm_kernel(x_ref, w_ref, b_ref, o_ref, *, act):
    acc = jnp.dot(x_ref[...], w_ref[...], preferred_element_type=jnp.float32)
    acc = acc + b_ref[...]
    if act == "relu":
        acc = jnp.maximum(acc, 0.0)
    o_ref[...] = acc.astype(o_ref.dtype)


def _mm_res_kernel(x_ref, w_ref, b_ref, r_ref, o_ref):
    acc = jnp.dot(x_ref[...], w_ref[...], preferred_element_type=jnp.float32)
    acc = acc + b_ref[...] + r_ref[...].astype(jnp.float32)
    o_ref[...] = jnp.maximum(acc, 0.0).astype(o_ref.dtype)


@functools.lru_cache(maxsize=None)
def _mm_call(Mp, K, N, tm, tn, act, has_res, out_dtype_name):
    out_dtype = jnp.dtype(out_dtype_name)
    in_specs = [
        pl.BlockSpec((tm, K), lambda i, j: (i, 0)),   # activations (K resident)
        pl.BlockSpec((K, tn), lambda i, j: (0, j)),   # weights     (K resident)
        pl.BlockSpec((1, tn), lambda i, j: (0, j)),   # bias
    ]
    if has_res:
        in_specs.append(pl.BlockSpec((tm, tn), lambda i, j: (i, j)))
        kern = _mm_res_kernel
    else:
        kern = functools.partial(_mm_kernel, act=act)
    f = pl.pallas_call(
        kern,
        out_shape=jax.ShapeDtypeStruct((Mp, N), out_dtype),
        grid_spec=pltpu.PrefetchScalarGridSpec(
            num_scalar_prefetch=0,
            grid=(Mp // tm, N // tn),
            in_specs=in_specs,
            out_specs=pl.BlockSpec((tm, tn), lambda i, j: (i, j)),
        ),
        compiler_params=pltpu.CompilerParams(
            dimension_semantics=("parallel", "parallel"),
            vmem_limit_bytes=_VMEM_LIMIT),
    )
    return jax.jit(f)


def matmul_bias_act(x, w, b, act="none", residual=None, out_dtype=jnp.bfloat16):
    """x: (M, K) bf16, w: (K, N) bf16, b: (1, N) f32, residual: (M, N) or None."""
    M, K = x.shape
    N = w.shape[1]
    tm = 256 if M > 256 else _round_up(M, 8)
    Mp = _round_up(M, tm)
    tn = 256 if (N >= 256 and N % 256 == 0) else N
    if Mp != M:
        x = jnp.pad(x, ((0, Mp - M), (0, 0)))
        if residual is not None:
            residual = jnp.pad(residual, ((0, Mp - M), (0, 0)))
    args = (x, w, b) if residual is None else (x, w, b, residual)
    out = _mm_call(Mp, K, N, tm, tn, act, residual is not None,
                   jnp.dtype(out_dtype).name)(*args)
    return out[:M]


# ----------------------------------------------------------------------------
# Kernel 2: direct spatial conv — one MXU matmul per tap over row-shifted
# windows of the flattened padded image (no im2col in HBM).
# ----------------------------------------------------------------------------
def _conv_tap_kernel(x_ref, w_ref, b_ref, o_ref, *, offsets, act):
    m = pl.program_id(2)
    tm = o_ref.shape[1]
    base = pl.multiple_of(m * tm, 8)
    acc = None
    for t, off in enumerate(offsets):
        xs = x_ref[0, pl.ds(base + off, tm), :].astype(jnp.bfloat16)
        d = jnp.dot(xs, w_ref[t], preferred_element_type=jnp.float32)
        acc = d if acc is None else acc + d
    acc = acc + b_ref[...]
    if act == "relu":
        acc = jnp.maximum(acc, 0.0)
    o_ref[0] = acc.astype(o_ref.dtype)


@functools.lru_cache(maxsize=None)
def _conv_call(B, Lpad, Kc, T, Cout, Lc, tm, tn, offsets, act, out_dtype_name):
    kern = functools.partial(_conv_tap_kernel, offsets=offsets, act=act)
    f = pl.pallas_call(
        kern,
        out_shape=jax.ShapeDtypeStruct((B, Lc, Cout), jnp.dtype(out_dtype_name)),
        grid_spec=pltpu.PrefetchScalarGridSpec(
            num_scalar_prefetch=0,
            grid=(B, Cout // tn, Lc // tm),
            in_specs=[
                pl.BlockSpec((1, Lpad, Kc), lambda b, n, m: (b, 0, 0)),  # image
                pl.BlockSpec((T, Kc, tn), lambda b, n, m: (0, 0, n)),    # taps
                pl.BlockSpec((1, tn), lambda b, n, m: (0, n)),           # bias
            ],
            out_specs=pl.BlockSpec((1, tm, tn), lambda b, n, m: (b, m, n)),
        ),
        compiler_params=pltpu.CompilerParams(
            dimension_semantics=("parallel", "parallel", "parallel"),
            vmem_limit_bytes=_VMEM_LIMIT),
    )
    return jax.jit(f)


def conv_spatial(x, cp, act="relu", out_dtype=jnp.bfloat16):
    """Spatial (3x3 / 7x7) conv.  x: (B, H, W, Cin) float32."""
    x = x.astype(jnp.float32)
    B = x.shape[0]
    k, s, p = cp["k"], cp["s"], cp["p"]
    w, bias = cp["w"], cp["b"]
    T, Kc, Cout = w.shape
    T1 = int(round(T ** 0.5))
    xp = jnp.pad(x, ((0, 0), (p, p), (p, p), (0, 0)))
    if s == 2:
        # 2x2 space-to-depth: the stride-2 conv becomes a stride-1 T1xT1 conv.
        Hh, Wh = xp.shape[1] // 2, xp.shape[2] // 2
        xp = xp.reshape(B, Hh, 2, Wh, 2, xp.shape[3])
        xp = xp.transpose(0, 1, 3, 2, 4, 5).reshape(B, Hh, Wh, -1)
    Hx, Wx, Kin = xp.shape[1], xp.shape[2], xp.shape[3]
    assert Kin == Kc
    Hv, Wv = Hx - T1 + 1, Wx - T1 + 1            # valid extent == (Ho, Wo)
    offsets = tuple(a * Wx + b for a in range(T1) for b in range(T1))
    max_off = offsets[-1]
    L = Hx * Wx
    Lneed = L - max_off
    tm = _round_up(Lneed, 8) if Lneed <= 512 else 256
    Lc = _round_up(Lneed, tm)
    Lpad = _round_up(Lc + max_off, 8)
    xf = jnp.pad(xp.reshape(B, L, Kc), ((0, 0), (0, Lpad - L), (0, 0)))
    tn = 256 if (Cout >= 256 and Cout % 256 == 0) else Cout
    of = _conv_call(B, Lpad, Kc, T, Cout, Lc, tm, tn, offsets, act,
                    jnp.dtype(out_dtype).name)(xf, w, bias)
    if Lc < L:
        of = jnp.pad(of, ((0, 0), (0, L - Lc), (0, 0)))
    return of[:, :L, :].reshape(B, Hx, Wx, Cout)[:, :Hv, :Wv, :]


# ----------------------------------------------------------------------------
# Kernel 3: 3x3 / stride-2 max-pool via the same shifted-window trick.
# ----------------------------------------------------------------------------
def _maxpool_tap_kernel(x_ref, o_ref, *, offsets):
    m = pl.program_id(1)
    tm = o_ref.shape[1]
    base = pl.multiple_of(m * tm, 8)
    r = x_ref[0, pl.ds(base + offsets[0], tm), :]
    for off in offsets[1:]:
        r = jnp.maximum(r, x_ref[0, pl.ds(base + off, tm), :])
    o_ref[0] = r.astype(o_ref.dtype)


@functools.lru_cache(maxsize=None)
def _maxpool_call(B, Lpad, C, Lc, tm, offsets):
    kern = functools.partial(_maxpool_tap_kernel, offsets=offsets)
    f = pl.pallas_call(
        kern,
        out_shape=jax.ShapeDtypeStruct((B, Lc, C), jnp.bfloat16),
        grid_spec=pltpu.PrefetchScalarGridSpec(
            num_scalar_prefetch=0,
            grid=(B, Lc // tm),
            in_specs=[pl.BlockSpec((1, Lpad, C), lambda b, m: (b, 0, 0))],
            out_specs=pl.BlockSpec((1, tm, C), lambda b, m: (b, m, 0)),
        ),
        compiler_params=pltpu.CompilerParams(
            dimension_semantics=("parallel", "parallel"),
            vmem_limit_bytes=_VMEM_LIMIT),
    )
    return jax.jit(f)


def maxpool3x3s2(x):
    """3x3 / stride-2 / pad-1 max-pool.  Input is post-ReLU (>= 0), so zero
    padding is equivalent to -inf padding."""
    x = x.astype(jnp.float32)
    B, H, W, C = x.shape
    Ho, Wo = (H - 1) // 2 + 1, (W - 1) // 2 + 1
    xp = jnp.pad(x, ((0, 0), (1, 1), (1, 1), (0, 0)))
    Hx, Wx = H + 2, W + 2
    offsets = tuple(a * Wx + b for a in range(3) for b in range(3))
    max_off = offsets[-1]
    L = Hx * Wx
    Lneed = L - max_off
    tm = _round_up(Lneed, 8) if Lneed <= 512 else 256
    Lc = _round_up(Lneed, tm)
    Lpad = _round_up(Lc + max_off, 8)
    xf = jnp.pad(xp.reshape(B, L, C), ((0, 0), (0, Lpad - L), (0, 0)))
    of = _maxpool_call(B, Lpad, C, Lc, tm, offsets)(xf)
    if Lc < L:
        of = jnp.pad(of, ((0, 0), (0, L - Lc), (0, 0)))
    full = of[:, :L, :].reshape(B, Hx, Wx, C)
    return full[:, 0:2 * Ho:2, 0:2 * Wo:2, :]


# ----------------------------------------------------------------------------
# Kernel 4: head — AdaptiveAvgPool2d(1), Convmask 1x1, AvgPool2d(2), tanh,
# all expressed as (small) MXU matmuls.
# ----------------------------------------------------------------------------
def _head_kernel(x_ref, wm_ref, ap_ref, am_ref, pooled_ref, mask_ref):
    x = x_ref[...].astype(jnp.float32)                                     # (BHW, C)
    pooled_ref[...] = jnp.dot(ap_ref[...], x,
                              preferred_element_type=jnp.float32)          # (B, C)
    m = jnp.dot(x, wm_ref[...], preferred_element_type=jnp.float32)        # (BHW, 1)
    pm = jnp.dot(am_ref[...], m, preferred_element_type=jnp.float32)       # (BHWp, 1)
    mask_ref[...] = jnp.tanh(pm)


@functools.lru_cache(maxsize=None)
def _head_call(BHW, C, B, BHWp):
    f = pl.pallas_call(
        _head_kernel,
        out_shape=(jax.ShapeDtypeStruct((B, C), jnp.float32),
                   jax.ShapeDtypeStruct((BHWp, 1), jnp.float32)),
        compiler_params=pltpu.CompilerParams(vmem_limit_bytes=_VMEM_LIMIT),
    )
    return jax.jit(f)


def head(x5, wmask):
    B, h, w, C = x5.shape
    HW = h * w
    Hp, Wp = h // 2, w // 2
    HWp = Hp * Wp
    # constant pooling matrices (built once per shape on the host)
    P = np.zeros((HW, HWp), np.float32)
    for i in range(h):
        for j in range(w):
            if i // 2 < Hp and j // 2 < Wp:
                P[i * w + j, (i // 2) * Wp + (j // 2)] = 0.25
    ap = np.zeros((B, B * HW), np.float32)
    am = np.zeros((B * HWp, B * HW), np.float32)
    for b in range(B):
        ap[b, b * HW:(b + 1) * HW] = 1.0 / HW
        am[b * HWp:(b + 1) * HWp, b * HW:(b + 1) * HW] = P.T
    x2 = x5.reshape(B * HW, C)
    pooled, mask = _head_call(B * HW, C, B, B * HWp)(
        x2, wmask.reshape(C, 1).astype(jnp.float32),
        jnp.asarray(ap), jnp.asarray(am))
    return pooled, mask.reshape(B, HWp)


# ----------------------------------------------------------------------------
# Bottleneck block (residual add + ReLU fused into the conv3 matmul epilogue).
# ----------------------------------------------------------------------------
def bottleneck(x, blk):
    B, H, W, Cin = x.shape
    if "down" in blk:
        s = blk["down"]["s"]
        xi = x[:, ::s, ::s, :] if s > 1 else x
        Bi, Hi, Wi, Ci = xi.shape
        id_flat = matmul_bias_act(xi.reshape(Bi * Hi * Wi, Ci),
                                  blk["down"]["w"], blk["down"]["b"],
                                  act="none", out_dtype=jnp.bfloat16)
    else:
        id_flat = x.reshape(B * H * W, Cin)
    out = matmul_bias_act(x.reshape(B * H * W, Cin), blk["conv1"]["w"],
                          blk["conv1"]["b"], act="relu",
                          out_dtype=jnp.float32).reshape(B, H, W, -1)
    out = conv_spatial(out, blk["conv2"], act="relu", out_dtype=jnp.bfloat16)
    B2, Ho, Wo, Cm = out.shape
    out = matmul_bias_act(out.reshape(B2 * Ho * Wo, Cm), blk["conv3"]["w"],
                          blk["conv3"]["b"], act="relu", residual=id_flat,
                          out_dtype=jnp.bfloat16)
    return out.reshape(B2, Ho, Wo, -1)


# ----------------------------------------------------------------------------
# Deterministic synthetic parameters (resnet50 + swap-head shapes).  BatchNorm
# scale is folded into the weights at build time; spatial weights are stored
# pre-transformed as (taps, Kc, Cout) bf16 (stride-2 convs in space-to-depth
# form); the two classifiers are fused along the output dimension.
# ----------------------------------------------------------------------------
class ParamGen:
    def __init__(self, seed):
        self.key = jax.random.PRNGKey(seed)

    def next(self):
        self.key, k = jax.random.split(self.key)
        return k

    def conv(self, kh, kw, cin, cout, stride=1, pad=0):
        w = jax.random.normal(self.next(), (kh, kw, cin, cout), jnp.float32)
        w = w * (2.0 / (kh * kw * cin)) ** 0.5 * 0.5
        scale = 1.0 + 0.1 * jax.random.normal(self.next(), (cout,), jnp.float32)
        bias = 0.1 * jax.random.normal(self.next(), (cout,), jnp.float32)
        wf = w * scale[None, None, None, :]            # fold BN at build time
        b2 = bias.reshape(1, cout).astype(jnp.float32)
        if kh == 1 and kw == 1:
            return {"kind": "mm", "s": stride,
                    "w": wf.reshape(cin, cout).astype(jnp.bfloat16), "b": b2}
        if stride == 1:
            w2 = wf.reshape(kh * kw, cin, cout)
        else:   # stride 2 -> equivalent stride-1 conv on the 2x2 phase image
            T1 = (kh + 1) // 2
            wp = jnp.pad(wf, ((0, 2 * T1 - kh), (0, 2 * T1 - kw), (0, 0), (0, 0)))
            w2 = wp.reshape(T1, 2, T1, 2, cin, cout).transpose(0, 2, 1, 3, 4, 5)
            w2 = w2.reshape(T1 * T1, 4 * cin, cout)
        return {"kind": "tap", "k": kh, "s": stride, "p": pad,
                "w": w2.astype(jnp.bfloat16), "b": b2}

    def linear(self, din, dout):
        w = jax.random.normal(self.next(), (din, dout), jnp.float32) * (1.0 / din) ** 0.5
        b = 0.1 * jax.random.normal(self.next(), (dout,), jnp.float32)
        return w, b


def make_params(num_classes, seed=0):
    pg = ParamGen(seed)
    params = {"conv1": pg.conv(7, 7, 3, 64, stride=2, pad=3)}
    layers = []
    in_ch = 64
    for width, blocks, stride in [(64, 3, 1), (128, 4, 2), (256, 6, 2), (512, 3, 2)]:
        layer = []
        for bi in range(blocks):
            s = stride if bi == 0 else 1
            blk = {"conv1": pg.conv(1, 1, in_ch, width),
                   "conv2": pg.conv(3, 3, width, width, stride=s, pad=1),
                   "conv3": pg.conv(1, 1, width, width * 4)}
            if bi == 0 and (s != 1 or in_ch != width * 4):
                blk["down"] = pg.conv(1, 1, in_ch, width * 4, stride=s)
            layer.append(blk)
            in_ch = width * 4
        layers.append(layer)
    params["layers"] = layers
    params["convmask"] = (jax.random.normal(pg.next(), (2048,), jnp.float32)
                          * (1.0 / 2048) ** 0.5)
    cw, cb = pg.linear(2048, num_classes)
    sw, sb = pg.linear(2048, 2 * num_classes)
    params["cls_w"] = jnp.concatenate([cw, sw], axis=1).astype(jnp.bfloat16)
    params["cls_b"] = jnp.concatenate([cb, sb]).reshape(1, -1).astype(jnp.float32)
    params["num_classes"] = num_classes
    return params


# ----------------------------------------------------------------------------
# forward
# ----------------------------------------------------------------------------
def resnet_swap_2loss_add_forward(x_nchw, params):
    x = jnp.transpose(x_nchw, (0, 2, 3, 1)).astype(jnp.float32)   # NCHW -> NHWC
    x = conv_spatial(x, params["conv1"], act="relu", out_dtype=jnp.float32)
    x = maxpool3x3s2(x)                                            # -> bf16
    for layer in params["layers"]:                                 # stages 1..4
        for blk in layer:
            x = bottleneck(x, blk)
    pooled, mask = head(x, params["convmask"])
    nc = params["num_classes"]
    logits = matmul_bias_act(pooled.astype(jnp.bfloat16), params["cls_w"],
                             params["cls_b"], act="none",
                             out_dtype=jnp.float32)
    return [logits[:, :nc], logits[:, nc:], mask]


# ----------------------------------------------------------------------------
if __name__ == "__main__":
    num_classes = 10
    B, C, H, W = 2, 3, 64, 64        # small; still gives 2x2x2048 at stage 4
    key = jax.random.PRNGKey(0)
    x = jax.random.normal(key, (B, C, H, W), jnp.float32)

    params = make_params(num_classes, seed=0)
    out = resnet_swap_2loss_add_forward(x, params)
    out = [jax.block_until_ready(o) for o in out]

    assert out[0].shape == (B, num_classes)
    assert out[1].shape == (B, 2 * num_classes)
    assert out[2].shape == (B, 1)
    assert all(bool(jnp.all(jnp.isfinite(o))) for o in out)
    print("KERNEL_OK")
</pallas_src>

<mosaic_0001>
module attributes {stable_mosaic.version = 11 : i64} {
  func.func @_conv_tap_kernel(%arg0: i32, %arg1: i32, %arg2: i32, %arg3: memref<1x1392x12xf32, #tpu.memory_space<vmem>>, %arg4: memref<16x12x64xbf16, #tpu.memory_space<vmem>>, %arg5: memref<1x64xf32, #tpu.memory_space<vmem>>, %arg6: memref<1x256x64xf32, #tpu.memory_space<vmem>>) attributes {dimension_semantics = [#tpu.dimension_semantics<parallel>, #tpu.dimension_semantics<parallel>, #tpu.dimension_semantics<parallel>], iteration_bounds = array<i64: 2, 1, 5>, scalar_prefetch = 0 : i64, scratch_operands = 0 : i64, tpu.core_type = #tpu.core_type<tc>, window_params = [{transform_indices = @transform_0, window_bounds = array<i64: 1, 1392, 12>}, {transform_indices = @transform_1, window_bounds = array<i64: 16, 12, 64>}, {transform_indices = @transform_2, window_bounds = array<i64: 1, 64>}, {transform_indices = @transform_3, window_bounds = array<i64: 1, 256, 64>}]} {
    %c256_i32 = arith.constant 256 : i32
    %0 = arith.muli %arg2, %c256_i32 : i32
    %1 = tpu.assume_multiple %0, 8 : i32
    %c0_i32 = arith.constant 0 : i32
    %2 = arith.addi %1, %c0_i32 : i32
    %c0 = arith.constant 0 : index
    %3 = arith.index_cast %2 : i32 to index
    %c0_0 = arith.constant 0 : index
    %4 = vector.load %arg3[%c0, %3, %c0_0] : memref<1x1392x12xf32, #tpu.memory_space<vmem>>, vector<1x256x12xf32>
    %5 = vector.shape_cast %4 : vector<1x256x12xf32> to vector<256x12xf32>
    %6 = arith.truncf %5 : vector<256x12xf32> to vector<256x12xbf16>
    %c0_1 = arith.constant 0 : index
    %c0_2 = arith.constant 0 : index
    %c0_3 = arith.constant 0 : index
    %7 = vector.load %arg4[%c0_1, %c0_2, %c0_3] : memref<16x12x64xbf16, #tpu.memory_space<vmem>>, vector<1x12x64xbf16>
    %8 = vector.shape_cast %7 : vector<1x12x64xbf16> to vector<12x64xbf16>
    %cst = arith.constant dense<0.000000e+00> : vector<256x64xf32>
    %9 = tpu.matmul %6, %8, %cst {dimension_numbers = #tpu.dot_dimension_numbers<[1], [0], [0], [1], [0, 0, 1, 1], [], []>} : vector<256x12xbf16>, vector<12x64xbf16>, vector<256x64xf32> -> vector<256x64xf32>
    %c1_i32 = arith.constant 1 : i32
    %10 = arith.addi %1, %c1_i32 : i32
    %c0_4 = arith.constant 0 : index
    %11 = arith.index_cast %10 : i32 to index
    %c0_5 = arith.constant 0 : index
    %12 = vector.load %arg3[%c0_4, %11, %c0_5] : memref<1x1392x12xf32, #tpu.memory_space<vmem>>, vector<1x256x12xf32>
    %13 = vector.shape_cast %12 : vector<1x256x12xf32> to vector<256x12xf32>
    %14 = arith.truncf %13 : vector<256x12xf32> to vector<256x12xbf16>
    %c1 = arith.constant 1 : index
    %c0_6 = arith.constant 0 : index
    %c0_7 = arith.constant 0 : index
    %15 = vector.load %arg4[%c1, %c0_6, %c0_7] : memref<16x12x64xbf16, #tpu.memory_space<vmem>>, vector<1x12x64xbf16>
    %16 = vector.shape_cast %15 : vector<1x12x64xbf16> to vector<12x64xbf16>
    %cst_8 = arith.constant dense<0.000000e+00> : vector<256x64xf32>
    %17 = tpu.matmul %14, %16, %cst_8 {dimension_numbers = #tpu.dot_dimension_numbers<[1], [0], [0], [1], [0, 0, 1, 1], [], []>} : vector<256x12xbf16>, vector<12x64xbf16>, vector<256x64xf32> -> vector<256x64xf32>
    %18 = arith.addf %9, %17 : vector<256x64xf32>
    %c2_i32 = arith.constant 2 : i32
    %19 = arith.addi %1, %c2_i32 : i32
    %c0_9 = arith.constant 0 : index
    %20 = arith.index_cast %19 : i32 to index
    %c0_10 = arith.constant 0 : index
    %21 = vector.load %arg3[%c0_9, %20, %c0_10] : memref<1x1392x12xf32, #tpu.memory_space<vmem>>, vector<1x256x12xf32>
    %22 = vector.shape_cast %21 : vector<1x256x12xf32> to vector<256x12xf32>
    %23 = arith.truncf %22 : vector<256x12xf32> to vector<256x12xbf16>
    %c2 = arith.constant 2 : index
    %c0_11 = arith.constant 0 : index
    %c0_12 = arith.constant 0 : index
    %24 = vector.load %arg4[%c2, %c0_11, %c0_12] : memref<16x12x64xbf16, #tpu.memory_space<vmem>>, vector<1x12x64xbf16>
    %25 = vector.shape_cast %24 : vector<1x12x64xbf16> to vector<12x64xbf16>
    %cst_13 = arith.constant dense<0.000000e+00> : vector<256x64xf32>
    %26 = tpu.matmul %23, %25, %cst_13 {dimension_numbers = #tpu.dot_dimension_numbers<[1], [0], [0], [1], [0, 0, 1, 1], [], []>} : vector<256x12xbf16>, vector<12x64xbf16>, vector<256x64xf32> -> vector<256x64xf32>
    %27 = arith.addf %18, %26 : vector<256x64xf32>
    %c3_i32 = arith.constant 3 : i32
    %28 = arith.addi %1, %c3_i32 : i32
    %c0_14 = arith.constant 0 : index
    %29 = arith.index_cast %28 : i32 to index
    %c0_15 = arith.constant 0 : index
    %30 = vector.load %arg3[%c0_14, %29, %c0_15] : memref<1x1392x12xf32, #tpu.memory_space<vmem>>, vector<1x256x12xf32>
    %31 = vector.shape_cast %30 : vector<1x256x12xf32> to vector<256x12xf32>
    %32 = arith.truncf %31 : vector<256x12xf32> to vector<256x12xbf16>
    %c3 = arith.constant 3 : index
    %c0_16 = arith.constant 0 : index
    %c0_17 = arith.constant 0 : index
    %33 = vector.load %arg4[%c3, %c0_16, %c0_17] : memref<16x12x64xbf16, #tpu.memory_space<vmem>>, vector<1x12x64xbf16>
    %34 = vector.shape_cast %33 : vector<1x12x64xbf16> to vector<12x64xbf16>
    %cst_18 = arith.constant dense<0.000000e+00> : vector<256x64xf32>
    %35 = tpu.matmul %32, %34, %cst_18 {dimension_numbers = #tpu.dot_dimension_numbers<[1], [0], [0], [1], [0, 0, 1, 1], [], []>} : vector<256x12xbf16>, vector<12x64xbf16>, vector<256x64xf32> -> vector<256x64xf32>
    %36 = arith.addf %27, %35 : vector<256x64xf32>
    %c35_i32 = arith.constant 35 : i32
    %37 = arith.addi %1, %c35_i32 : i32
    %c0_19 = arith.constant 0 : index
    %38 = arith.index_cast %37 : i32 to index
    %c0_20 = arith.constant 0 : index
    %39 = vector.load %arg3[%c0_19, %38, %c0_20] : memref<1x1392x12xf32, #tpu.memory_space<vmem>>, vector<1x256x12xf32>
    %40 = vector.shape_cast %39 : vector<1x256x12xf32> to vector<256x12xf32>
    %41 = arith.truncf %40 : vector<256x12xf32> to vector<256x12xbf16>
    %c4 = arith.constant 4 : index
    %c0_21 = arith.constant 0 : index
    %c0_22 = arith.constant 0 : index
    %42 = vector.load %arg4[%c4, %c0_21, %c0_22] : memref<16x12x64xbf16, #tpu.memory_space<vmem>>, vector<1x12x64xbf16>
    %43 = vector.shape_cast %42 : vector<1x12x64xbf16> to vector<12x64xbf16>
    %cst_23 = arith.constant dense<0.000000e+00> : vector<256x64xf32>
    %44 = tpu.matmul %41, %43, %cst_23 {dimension_numbers = #tpu.dot_dimension_numbers<[1], [0], [0], [1], [0, 0, 1, 1], [], []>} : vector<256x12xbf16>, vector<12x64xbf16>, vector<256x64xf32> -> vector<256x64xf32>
    %45 = arith.addf %36, %44 : vector<256x64xf32>
    %c36_i32 = arith.constant 36 : i32
    %46 = arith.addi %1, %c36_i32 : i32
    %c0_24 = arith.constant 0 : index
    %47 = arith.index_cast %46 : i32 to index
    %c0_25 = arith.constant 0 : index
    %48 = vector.load %arg3[%c0_24, %47, %c0_25] : memref<1x1392x12xf32, #tpu.memory_space<vmem>>, vector<1x256x12xf32>
    %49 = vector.shape_cast %48 : vector<1x256x12xf32> to vector<256x12xf32>
    %50 = arith.truncf %49 : vector<256x12xf32> to vector<256x12xbf16>
    %c5 = arith.constant 5 : index
    %c0_26 = arith.constant 0 : index
    %c0_27 = arith.constant 0 : index
    %51 = vector.load %arg4[%c5, %c0_26, %c0_27] : memref<16x12x64xbf16, #tpu.memory_space<vmem>>, vector<1x12x64xbf16>
    %52 = vector.shape_cast %51 : vector<1x12x64xbf16> to vector<12x64xbf16>
    %cst_28 = arith.constant dense<0.000000e+00> : vector<256x64xf32>
    %53 = tpu.matmul %50, %52, %cst_28 {dimension_numbers = #tpu.dot_dimension_numbers<[1], [0], [0], [1], [0, 0, 1, 1], [], []>} : vector<256x12xbf16>, vector<12x64xbf16>, vector<256x64xf32> -> vector<256x64xf32>
    %54 = arith.addf %45, %53 : vector<256x64xf32>
    %c37_i32 = arith.constant 37 : i32
    %55 = arith.addi %1, %c37_i32 : i32
    %c0_29 = arith.constant 0 : index
    %56 = arith.index_cast %55 : i32 to index
    %c0_30 = arith.constant 0 : index
    %57 = vector.load %arg3[%c0_29, %56, %c0_30] : memref<1x1392x12xf32, #tpu.memory_space<vmem>>, vector<1x256x12xf32>
    %58 = vector.shape_cast %57 : vector<1x256x12xf32> to vector<256x12xf32>
    %59 = arith.truncf %58 : vector<256x12xf32> to vector<256x12xbf16>
    %c6 = arith.constant 6 : index
    %c0_31 = arith.constant 0 : index
    %c0_32 = arith.constant 0 : index
    %60 = vector.load %arg4[%c6, %c0_31, %c0_32] : memref<16x12x64xbf16, #tpu.memory_space<vmem>>, vector<1x12x64xbf16>
    %61 = vector.shape_cast %60 : vector<1x12x64xbf16> to vector<12x64xbf16>
    %cst_33 = arith.constant dense<0.000000e+00> : vector<256x64xf32>
    %62 = tpu.matmul %59, %61, %cst_33 {dimension_numbers = #tpu.dot_dimension_numbers<[1], [0], [0], [1], [0, 0, 1, 1], [], []>} : vector<256x12xbf16>, vector<12x64xbf16>, vector<256x64xf32> -> vector<256x64xf32>
    %63 = arith.addf %54, %62 : vector<256x64xf32>
    %c38_i32 = arith.constant 38 : i32
    %64 = arith.addi %1, %c38_i32 : i32
    %c0_34 = arith.constant 0 : index
    %65 = arith.index_cast %64 : i32 to index
    %c0_35 = arith.constant 0 : index
    %66 = vector.load %arg3[%c0_34, %65, %c0_35] : memref<1x1392x12xf32, #tpu.memory_space<vmem>>, vector<1x256x12xf32>
    %67 = vector.shape_cast %66 : vector<1x256x12xf32> to vector<256x12xf32>
    %68 = arith.truncf %67 : vector<256x12xf32> to vector<256x12xbf16>
    %c7 = arith.constant 7 : index
    %c0_36 = arith.constant 0 : index
    %c0_37 = arith.constant 0 : index
    %69 = vector.load %arg4[%c7, %c0_36, %c0_37] : memref<16x12x64xbf16, #tpu.memory_space<vmem>>, vector<1x12x64xbf16>
    %70 = vector.shape_cast %69 : vector<1x12x64xbf16> to vector<12x64xbf16>
    %cst_38 = arith.constant dense<0.000000e+00> : vector<256x64xf32>
    %71 = tpu.matmul %68, %70, %cst_38 {dimension_numbers = #tpu.dot_dimension_numbers<[1], [0], [0], [1], [0, 0, 1, 1], [], []>} : vector<256x12xbf16>, vector<12x64xbf16>, vector<256x64xf32> -> vector<256x64xf32>
    %72 = arith.addf %63, %71 : vector<256x64xf32>
    %c70_i32 = arith.constant 70 : i32
    %73 = arith.addi %1, %c70_i32 : i32
    %c0_39 = arith.constant 0 : index
    %74 = arith.index_cast %73 : i32 to index
    %c0_40 = arith.constant 0 : index
    %75 = vector.load %arg3[%c0_39, %74, %c0_40] : memref<1x1392x12xf32, #tpu.memory_space<vmem>>, vector<1x256x12xf32>
    %76 = vector.shape_cast %75 : vector<1x256x12xf32> to vector<256x12xf32>
    %77 = arith.truncf %76 : vector<256x12xf32> to vector<256x12xbf16>
    %c8 = arith.constant 8 : index
    %c0_41 = arith.constant 0 : index
    %c0_42 = arith.constant 0 : index
    %78 = vector.load %arg4[%c8, %c0_41, %c0_42] : memref<16x12x64xbf16, #tpu.memory_space<vmem>>, vector<1x12x64xbf16>
    %79 = vector.shape_cast %78 : vector<1x12x64xbf16> to vector<12x64xbf16>
    %cst_43 = arith.constant dense<0.000000e+00> : vector<256x64xf32>
    %80 = tpu.matmul %77, %79, %cst_43 {dimension_numbers = #tpu.dot_dimension_numbers<[1], [0], [0], [1], [0, 0, 1, 1], [], []>} : vector<256x12xbf16>, vector<12x64xbf16>, vector<256x64xf32> -> vector<256x64xf32>
    %81 = arith.addf %72, %80 : vector<256x64xf32>
    %c71_i32 = arith.constant 71 : i32
    %82 = arith.addi %1, %c71_i32 : i32
    %c0_44 = arith.constant 0 : index
    %83 = arith.index_cast %82 : i32 to index
    %c0_45 = arith.constant 0 : index
    %84 = vector.load %arg3[%c0_44, %83, %c0_45] : memref<1x1392x12xf32, #tpu.memory_space<vmem>>, vector<1x256x12xf32>
    %85 = vector.shape_cast %84 : vector<1x256x12xf32> to vector<256x12xf32>
    %86 = arith.truncf %85 : vector<256x12xf32> to vector<256x12xbf16>
    %c9 = arith.constant 9 : index
    %c0_46 = arith.constant 0 : index
    %c0_47 = arith.constant 0 : index
    %87 = vector.load %arg4[%c9, %c0_46, %c0_47] : memref<16x12x64xbf16, #tpu.memory_space<vmem>>, vector<1x12x64xbf16>
    %88 = vector.shape_cast %87 : vector<1x12x64xbf16> to vector<12x64xbf16>
    %cst_48 = arith.constant dense<0.000000e+00> : vector<256x64xf32>
    %89 = tpu.matmul %86, %88, %cst_48 {dimension_numbers = #tpu.dot_dimension_numbers<[1], [0], [0], [1], [0, 0, 1, 1], [], []>} : vector<256x12xbf16>, vector<12x64xbf16>, vector<256x64xf32> -> vector<256x64xf32>
    %90 = arith.addf %81, %89 : vector<256x64xf32>
    %c72_i32 = arith.constant 72 : i32
    %91 = arith.addi %1, %c72_i32 : i32
    %c0_49 = arith.constant 0 : index
    %92 = arith.index_cast %91 : i32 to index
    %c0_50 = arith.constant 0 : index
    %93 = vector.load %arg3[%c0_49, %92, %c0_50] : memref<1x1392x12xf32, #tpu.memory_space<vmem>>, vector<1x256x12xf32>
    %94 = vector.shape_cast %93 : vector<1x256x12xf32> to vector<256x12xf32>
    %95 = arith.truncf %94 : vector<256x12xf32> to vector<256x12xbf16>
    %c10 = arith.constant 10 : index
    %c0_51 = arith.constant 0 : index
    %c0_52 = arith.constant 0 : index
    %96 = vector.load %arg4[%c10, %c0_51, %c0_52] : memref<16x12x64xbf16, #tpu.memory_space<vmem>>, vector<1x12x64xbf16>
    %97 = vector.shape_cast %96 : vector<1x12x64xbf16> to vector<12x64xbf16>
    %cst_53 = arith.constant dense<0.000000e+00> : vector<256x64xf32>
    %98 = tpu.matmul %95, %97, %cst_53 {dimension_numbers = #tpu.dot_dimension_numbers<[1], [0], [0], [1], [0, 0, 1, 1], [], []>} : vector<256x12xbf16>, vector<12x64xbf16>, vector<256x64xf32> -> vector<256x64xf32>
    %99 = arith.addf %90, %98 : vector<256x64xf32>
    %c73_i32 = arith.constant 73 : i32
    %100 = arith.addi %1, %c73_i32 : i32
    %c0_54 = arith.constant 0 : index
    %101 = arith.index_cast %100 : i32 to index
    %c0_55 = arith.constant 0 : index
    %102 = vector.load %arg3[%c0_54, %101, %c0_55] : memref<1x1392x12xf32, #tpu.memory_space<vmem>>, vector<1x256x12xf32>
    %103 = vector.shape_cast %102 : vector<1x256x12xf32> to vector<256x12xf32>
    %104 = arith.truncf %103 : vector<256x12xf32> to vector<256x12xbf16>
    %c11 = arith.constant 11 : index
    %c0_56 = arith.constant 0 : index
    %c0_57 = arith.constant 0 : index
    %105 = vector.load %arg4[%c11, %c0_56, %c0_57] : memref<16x12x64xbf16, #tpu.memory_space<vmem>>, vector<1x12x64xbf16>
    %106 = vector.shape_cast %105 : vector<1x12x64xbf16> to vector<12x64xbf16>
    %cst_58 = arith.constant dense<0.000000e+00> : vector<256x64xf32>
    %107 = tpu.matmul %104, %106, %cst_58 {dimension_numbers = #tpu.dot_dimension_numbers<[1], [0], [0], [1], [0, 0, 1, 1], [], []>} : vector<256x12xbf16>, vector<12x64xbf16>, vector<256x64xf32> -> vector<256x64xf32>
    %108 = arith.addf %99, %107 : vector<256x64xf32>
    %c105_i32 = arith.constant 105 : i32
    %109 = arith.addi %1, %c105_i32 : i32
    %c0_59 = arith.constant 0 : index
    %110 = arith.index_cast %109 : i32 to index
    %c0_60 = arith.constant 0 : index
    %111 = vector.load %arg3[%c0_59, %110, %c0_60] : memref<1x1392x12xf32, #tpu.memory_space<vmem>>, vector<1x256x12xf32>
    %112 = vector.shape_cast %111 : vector<1x256x12xf32> to vector<256x12xf32>
    %113 = arith.truncf %112 : vector<256x12xf32> to vector<256x12xbf16>
    %c12 = arith.constant 12 : index
    %c0_61 = arith.constant 0 : index
    %c0_62 = arith.constant 0 : index
    %114 = vector.load %arg4[%c12, %c0_61, %c0_62] : memref<16x12x64xbf16, #tpu.memory_space<vmem>>, vector<1x12x64xbf16>
    %115 = vector.shape_cast %114 : vector<1x12x64xbf16> to vector<12x64xbf16>
    %cst_63 = arith.constant dense<0.000000e+00> : vector<256x64xf32>
    %116 = tpu.matmul %113, %115, %cst_63 {dimension_numbers = #tpu.dot_dimension_numbers<[1], [0], [0], [1], [0, 0, 1, 1], [], []>} : vector<256x12xbf16>, vector<12x64xbf16>, vector<256x64xf32> -> vector<256x64xf32>
    %117 = arith.addf %108, %116 : vector<256x64xf32>
    %c106_i32 = arith.constant 106 : i32
    %118 = arith.addi %1, %c106_i32 : i32
    %c0_64 = arith.constant 0 : index
    %119 = arith.index_cast %118 : i32 to index
    %c0_65 = arith.constant 0 : index
    %120 = vector.load %arg3[%c0_64, %119, %c0_65] : memref<1x1392x12xf32, #tpu.memory_space<vmem>>, vector<1x256x12xf32>
    %121 = vector.shape_cast %120 : vector<1x256x12xf32> to vector<256x12xf32>
    %122 = arith.truncf %121 : vector<256x12xf32> to vector<256x12xbf16>
    %c13 = arith.constant 13 : index
    %c0_66 = arith.constant 0 : index
    %c0_67 = arith.constant 0 : index
    %123 = vector.load %arg4[%c13, %c0_66, %c0_67] : memref<16x12x64xbf16, #tpu.memory_space<vmem>>, vector<1x12x64xbf16>
    %124 = vector.shape_cast %123 : vector<1x12x64xbf16> to vector<12x64xbf16>
    %cst_68 = arith.constant dense<0.000000e+00> : vector<256x64xf32>
    %125 = tpu.matmul %122, %124, %cst_68 {dimension_numbers = #tpu.dot_dimension_numbers<[1], [0], [0], [1], [0, 0, 1, 1], [], []>} : vector<256x12xbf16>, vector<12x64xbf16>, vector<256x64xf32> -> vector<256x64xf32>
    %126 = arith.addf %117, %125 : vector<256x64xf32>
    %c107_i32 = arith.constant 107 : i32
    %127 = arith.addi %1, %c107_i32 : i32
    %c0_69 = arith.constant 0 : index
    %128 = arith.index_cast %127 : i32 to index
    %c0_70 = arith.constant 0 : index
    %129 = vector.load %arg3[%c0_69, %128, %c0_70] : memref<1x1392x12xf32, #tpu.memory_space<vmem>>, vector<1x256x12xf32>
    %130 = vector.shape_cast %129 : vector<1x256x12xf32> to vector<256x12xf32>
    %131 = arith.truncf %130 : vector<256x12xf32> to vector<256x12xbf16>
    %c14 = arith.constant 14 : index
    %c0_71 = arith.constant 0 : index
    %c0_72 = arith.constant 0 : index
    %132 = vector.load %arg4[%c14, %c0_71, %c0_72] : memref<16x12x64xbf16, #tpu.memory_space<vmem>>, vector<1x12x64xbf16>
    %133 = vector.shape_cast %132 : vector<1x12x64xbf16> to vector<12x64xbf16>
    %cst_73 = arith.constant dense<0.000000e+00> : vector<256x64xf32>
    %134 = tpu.matmul %131, %133, %cst_73 {dimension_numbers = #tpu.dot_dimension_numbers<[1], [0], [0], [1], [0, 0, 1, 1], [], []>} : vector<256x12xbf16>, vector<12x64xbf16>, vector<256x64xf32> -> vector<256x64xf32>
    %135 = arith.addf %126, %134 : vector<256x64xf32>
    %c108_i32 = arith.constant 108 : i32
    %136 = arith.addi %1, %c108_i32 : i32
    %c0_74 = arith.constant 0 : index
    %137 = arith.index_cast %136 : i32 to index
    %c0_75 = arith.constant 0 : index
    %138 = vector.load %arg3[%c0_74, %137, %c0_75] : memref<1x1392x12xf32, #tpu.memory_space<vmem>>, vector<1x256x12xf32>
    %139 = vector.shape_cast %138 : vector<1x256x12xf32> to vector<256x12xf32>
    %140 = arith.truncf %139 : vector<256x12xf32> to vector<256x12xbf16>
    %c15 = arith.constant 15 : index
    %c0_76 = arith.constant 0 : index
    %c0_77 = arith.constant 0 : index
    %141 = vector.load %arg4[%c15, %c0_76, %c0_77] : memref<16x12x64xbf16, #tpu.memory_space<vmem>>, vector<1x12x64xbf16>
    %142 = vector.shape_cast %141 : vector<1x12x64xbf16> to vector<12x64xbf16>
    %cst_78 = arith.constant dense<0.000000e+00> : vector<256x64xf32>
    %143 = tpu.matmul %140, %142, %cst_78 {dimension_numbers = #tpu.dot_dimension_numbers<[1], [0], [0], [1], [0, 0, 1, 1], [], []>} : vector<256x12xbf16>, vector<12x64xbf16>, vector<256x64xf32> -> vector<256x64xf32>
    %144 = arith.addf %135, %143 : vector<256x64xf32>
    %c0_79 = arith.constant 0 : index
    %c0_80 = arith.constant 0 : index
    %145 = vector.load %arg5[%c0_79, %c0_80] : memref<1x64xf32, #tpu.memory_space<vmem>>, vector<1x64xf32>
    %146 = vector.broadcast %145 : vector<1x64xf32> to vector<256x64xf32>
    %147 = arith.addf %144, %146 : vector<256x64xf32>
    %cst_81 = arith.constant 0.000000e+00 : f32
    %148 = vector.broadcast %cst_81 : f32 to vector<256x64xf32>
    %149 = arith.maximumf %147, %148 : vector<256x64xf32>
    %c0_82 = arith.constant 0 : index
    %c0_83 = arith.constant 0 : index
    %c0_84 = arith.constant 0 : index
    %150 = vector.load %arg6[%c0_82, %c0_83, %c0_84] : memref<1x256x64xf32, #tpu.memory_space<vmem>>, vector<1x256x64xf32>
    %151 = vector.shape_cast %150 : vector<1x256x64xf32> to vector<256x64xf32>
    %152 = vector.shape_cast %149 : vector<256x64xf32> to vector<1x256x64xf32>
    tpu.vector_store %arg6[%c0_82, %c0_83, %c0_84], %152 {strides = array<i32>} : memref<1x256x64xf32, #tpu.memory_space<vmem>>, vector<1x256x64xf32>,
    return
  }
  func.func @transform_0(%arg0: i32, %arg1: i32, %arg2: i32) -> (i32, i32, i32) {
    %c0_i32 = arith.constant 0 : i32
    %c0_i32_0 = arith.constant 0 : i32
    %c0_i32_1 = arith.constant 0 : i32
    return %arg0, %c0_i32, %c0_i32_0 : i32, i32, i32
  }
  func.func @transform_1(%arg0: i32, %arg1: i32, %arg2: i32) -> (i32, i32, i32) {
    %c0_i32 = arith.constant 0 : i32
    %c0_i32_0 = arith.constant 0 : i32
    %c0_i32_1 = arith.constant 0 : i32
    return %c0_i32, %c0_i32_0, %arg1 : i32, i32, i32
  }
  func.func @transform_2(%arg0: i32, %arg1: i32, %arg2: i32) -> (i32, i32) {
    %c0_i32 = arith.constant 0 : i32
    %c0_i32_0 = arith.constant 0 : i32
    return %c0_i32, %arg1 : i32, i32
  }
  func.func @transform_3(%arg0: i32, %arg1: i32, %arg2: i32) -> (i32, i32, i32) {
    %c0_i32 = arith.constant 0 : i32
    return %arg0, %arg2, %arg1 : i32, i32, i32
  }
}

</mosaic_0001>

<bundles_post_ra>
// kernel: tpu_custom_call.1
= control target key start
LH: loop header
LB: loop body
LE: loop exit
PB: predicated region body
PF: predicated region fallthrough
CT: control target
= control target key end

     0   :  { %s7526_s12 = smov 0   ;;  %s7528_s13 = smov 0   ;;  %s8958_s0 = inlined_call_operand.vmem [shape: f32[2,1392,12], index: 0, kind: input, shape index: {}]   ;;  %s8959_s1 = inlined_call_operand.vmem [shape: bf16[16,12,64], index: 1, kind: input, shape index: {}]   ;;  %s8960_s2 = inlined_call_operand.vmem [shape: f32[1,64], index: 2, kind: input, shape index: {}]   ;;  %s8961_s3 = inlined_call_operand.vmem [shape: f32[2,1280,64], index: 3, kind: output, shape index: {}]  }
   0x1   :  { %s7530_s14 = smov 0   ;;  %s7532_s15 = smov 0  }
   0x2   :  { %s7534_s16 = smov 0  }
   0x3 LB: > { %s25_s17 = sadd.s32 1, %s7496_s14  ;;  %s32_s18 = sadd.s32 1, %s7500_s15  ;;  %s7504_s16 = sphi %s7534_s16, %s13_s16   ;;  %s7500_s15 = sphi %s7532_s15, %s8995_s15   ;;  %s7496_s14 = sphi %s7530_s14, %s8994_s14   ;;  %s7492_s13 = sphi %s7528_s13, %s8993_s13   ;;  %s7488_s12 = sphi %s7526_s12, %s8992_s12  }
   0x4   : > { %p26_p0 = scmp.ge.s32.totalorder %s25_s17, 5  ;;  %p5291_p1 = scmp.ge.s32.totalorder %s7504_s16, 1 }
   0x5   : > { %p177_p2 = scmp.lt.s32.totalorder %s7504_s16, 11 }
   0x6   : > { %s8997_s17 = smov (%p26_p0, %s25_s17), 0  ;;  %s8999_s18 = smov (!%p26_p0, %s32_s18), %s7500_s15 }
   0x7   : > { %p178_p3 = pnand %p5291_p1, %p177_p2  ;;  %p34_p4 = scmp.ge.s32.totalorder %s8999_s18, 2 }
   0x9   : > { %s9001_s18 = smov (%p34_p4, %s8999_s18), 0  ;;  %181 = sbr.rel (%p178_p3) target bundleno = 754 (0x2f2), region = 32 }
  0x10   : > { %v7450_v0 = vld [vmem:[%s8959_s1 + $0x8] sm:$0x3f]   ;;  %vm400_vm0 = vcmask 1045504   ;;  %p215_p5 = scmp.lt.s32.totalorder %s7492_s13, 1  ;;  %v7451_v1 = vld [vmem:[%s8959_s1 + $0x40] sm:$0x3f]  }
  0x11   : > { %7392 = vmatprep.subr.msk.bf16.mxu1 %vm400_vm0, %v7450_v0  ;;  %v402_v2 = vsel %vm400_vm0, %v7450_v0, 0  ;;  %7400 = vmatprep.subr.msk.bf16.mxu0 %vm400_vm0, %v7451_v1  ;;  %v2701_v3 = vsel %vm400_vm0, %v7451_v1, 0  ;;  %v7452_v4 = vld [vmem:[%s8959_s1] sm:$0x3f]   ;;  %s5295_s26 = sshll.u32 %s7488_s12, 8  ;;  %vm351_vm1 = vcmask 97280  }
  0x12   : > { %6369 = vmatpush3.bf16.msra.mxu1 %v402_v2  ;;  %s9003_s13 = smov (!%p215_p5, %s7492_s13), 1  ;;  %6641 = vmatpush3.bf16.msra.mxu0 %v2701_v3  ;;  %v7453_v5 = vld [vmem:[%s8959_s1 + $0x48] sm:$0x3f]   ;;  %v7594_v13 = vld [vmem:[%s8959_s1 + $0x10] sm:$0x3f]   ;;  %v619_v16 = vsel %vm400_vm0, %v7452_v4, 0 }
  0x13   : > { %s7408_s25 = smul.u32 1392, %s9003_s13  ;;  %7393 = vmatprep.subr.msk.bf16.mxu1 %vm400_vm0, %v7452_v4  ;;  %7401 = vmatprep.subr.msk.bf16.mxu0 %vm400_vm0, %v7453_v5  ;;  %v3003_v21 = vsel %vm400_vm0, %v7453_v5, 0  ;;  %v7610_v27 = vld [vmem:[%s8959_s1 + $0x50] sm:$0x3f]   ;;  %s5293_s11 = sshll.u32 %s7488_s12, 5  ;;  %vm5081_vm2 = vcmask 523264  }
  0x14   : > { %p230_p6 = scmp.lt.s32.totalorder %s5293_s11, 159  ;;  %s7409_s19 = smul.u32 160, %s9003_s13 }
  0x15   : > { %s219_s4 = scalar_lea.vmem %s8958_s0, %s7408_s25 }
  0x16   : > { %s7583_s5 = scalar_lea.vmem %s219_s4, %s5295_s26  ;;  %s9005_s11 = smov (!%p230_p6, %s5293_s11), 159 }
  0x17   : > { %v5297_v6 = vld [vmem:[%s7583_s5 + $0x1] sm:$0xff]  ;;  %v5298_v7 = vld [vmem:[%s7583_s5 + $0x9] sm:$0xff]  ;;  %v5299_v11 = vld [vmem:[%s7583_s5 + $0x11] sm:$0xff]  ;;  %s236_s20 = sadd.s32 %s7409_s19, %s9005_s11 }
  0x18   : > { %v5678_v8 = vld [vmem:[%s7583_s5 + $0x46] sm:$0xff]  ;;  %v327_v9 = vpack.c.bf16 %v5298_v7, %v5297_v6  ;;  %v5679_v10 = vld [vmem:[%s7583_s5 + $0x4e] sm:$0xff]  ;;  %v5300_v12 = vld [vmem:[%s7583_s5 + $0x19] sm:$0xff] }
  0x19   : > { %v2628_v14 = vpack.c.bf16 %v5679_v10, %v5678_v8  ;;  %v328_v15 = vpack.c.bf16 %v5300_v12, %v5299_v11  ;;  %v5680_v17 = vld [vmem:[%s7583_s5 + $0x56] sm:$0xff]  ;;  %v5681_v18 = vld [vmem:[%s7583_s5 + $0x5e] sm:$0xff]  ;;  %v5302_v22 = vld [vmem:[%s7583_s5 + $0x29] sm:$0xff] }
  0x1a   : > { %v5301_v19 = vld [vmem:[%s7583_s5 + $0x21] sm:$0xff]  ;;  %6370 = vmatprep.mubr.msk.bf16.mxu1 %vm351_vm1, %v327_v9  ;;  %v2629_v20 = vpack.c.bf16 %v5681_v18, %v5680_v17  ;;  %v5683_v24 = vld [vmem:[%s7583_s5 + $0x6e] sm:$0xff]  ;;  %v5304_v29 = vld [vmem:[%s7583_s5 + $0x39] sm:$0xff] }
  0x1b   : > { %v5682_v23 = vld [vmem:[%s7583_s5 + $0x66] sm:$0xff]  ;;  %6642 = vmatprep.mubr.msk.bf16.mxu0 %vm351_vm1, %v2628_v14  ;;  %6371 = vmatmul.mubr.msk.bf16.vlgmr.msra.gmra.mrb[0].mxu1 %vm351_vm1, %v328_v15  ;;  %v329_v25 = vpack.c.bf16 %v5302_v22, %v5301_v19  ;;  %v5303_v28 = vld [vmem:[%s7583_s5 + $0x31] sm:$0xff]  ;;  %v5685_v31 = vld [vmem:[%s7583_s5 + $0x7e] sm:$0xff] }
  0x1c   : > { %v2630_v26 = vpack.c.bf16 %v5683_v24, %v5682_v23  ;;  %6403 = vmatpush3.bf16.msra.mxu1 %v619_v16  ;;  %6643 = vmatmul.mubr.msk.bf16.vlgmr.msra.gmra.mrb[0].mxu0 %vm351_vm1, %v2629_v20  ;;  %v5684_v30 = vld [vmem:[%s7583_s5 + $0x76] sm:$0xff]  ;;  %v5305_v32 = vld [vmem:[%s7583_s5 + $0x41] sm:$0xff]  ;;  %v7620_v33 = vld [vmem:[%s7583_s5 + $0x49] sm:$0xff]  ;;  %v330_v36 = vpack.c.bf16 %v5304_v29, %v5303_v28 }
  0x1d   : > { %6675 = vmatpush3.bf16.msra.mxu0 %v3003_v21  ;;  %6374 = vmatprep.mubr.msk.bf16.mxu1 %vm351_vm1, %v329_v25  ;;  %v5686_v34 = vld [vmem:[%s7583_s5 + $0x86] sm:$0xff]  ;;  %v5687_v35 = vld [vmem:[%s7583_s5 + $0x8e] sm:$0xff]  ;;  %v2631_v37 = vpack.c.bf16 %v5685_v31, %v5684_v30  ;;  %v331_v38 = vpack.c.bf16 %v7620_v33, %v5305_v32  ;;  %v7637_v41 = vld [vmem:[%s7583_s5 + $0x59] sm:$0xff] }
  0x1e   : > { %6646 = vmatprep.mubr.msk.bf16.mxu0 %vm351_vm1, %v2630_v26  ;;  %7394 = vmatprep.subr.msk.bf16.mxu1 %vm400_vm0, %v7594_v13  ;;  %v2632_v39 = vpack.c.bf16 %v5687_v35, %v5686_v34  ;;  %v7634_v40 = vld [vmem:[%s7583_s5 + $0x51] sm:$0xff]  ;;  %v5689_v43 = vld [vmem:[%s7583_s5 + $0x9e] sm:$0xff]  ;;  %v7646_v45 = vld [vmem:[%s7583_s5 + $0x69] sm:$0xff] }
  0x1f   : > { %7402 = vmatprep.subr.msk.bf16.mxu0 %vm400_vm0, %v7610_v27  ;;  %v5688_v42 = vld [vmem:[%s7583_s5 + $0x96] sm:$0xff]  ;;  %v7643_v44 = vld [vmem:[%s7583_s5 + $0x61] sm:$0xff]  ;;  %v5691_v47 = vld [vmem:[%s7583_s5 + $0xae] sm:$0xff]  ;;  %v332_v48 = vpack.c.bf16 %v7637_v41, %v7634_v40 }
  0x20   : > { %v5690_v46 = vld [vmem:[%s7583_s5 + $0xa6] sm:$0xff]  ;;  %v2633_v49 = vpack.c.bf16 %v5689_v43, %v5688_v42  ;;  %v333_v50 = vpack.c.bf16 %v7646_v45, %v7643_v44  ;;  %v7658_v52 = vld [vmem:[%s7583_s5 + $0x71] sm:$0xff]  ;;  %v7661_v53 = vld [vmem:[%s7583_s5 + $0x79] sm:$0xff] }
  0x21   : > { %v2634_v51 = vpack.c.bf16 %v5691_v47, %v5690_v46  ;;  %v5692_v54 = vld [vmem:[%s7583_s5 + $0xb6] sm:$0xff]  ;;  %v5693_v55 = vld [vmem:[%s7583_s5 + $0xbe] sm:$0xff]  ;;  %v7670_v57 = vld [vmem:[%s7583_s5 + $0x89] sm:$0xff]  ;;  %v334_v60 = vpack.c.bf16 %v7661_v53, %v7658_v52 }
  0x22   : > { %v7667_v56 = vld [vmem:[%s7583_s5 + $0x81] sm:$0xff]  ;;  %v5695_v59 = vld [vmem:[%s7583_s5 + $0xce] sm:$0xff]  ;;  %v2635_v61 = vpack.c.bf16 %v5693_v55, %v5692_v54  ;;  %v7685_v1 = vld [vmem:[%s7583_s5 + $0x99] sm:$0xff] }
  0x23   : > { %6375 = vmatmul.mubr.msk.bf16.gmra.mrb[4].mxu1 %vm351_vm1, %v330_v36  ;;  %v5694_v58 = vld [vmem:[%s7583_s5 + $0xc6] sm:$0xff]  ;;  %v335_v62 = vpack.c.bf16 %v7670_v57, %v7667_v56  ;;  %v7682_v0 = vld [vmem:[%s7583_s5 + $0x91] sm:$0xff]  ;;  %v5697_v3 = vld [vmem:[%s7583_s5 + $0xde] sm:$0xff] }
  0x24   : > { %6647 = vmatmul.mubr.msk.bf16.gmra.mrb[4].mxu0 %vm351_vm1, %v2631_v37  ;;  %6378 = vmatprep.mubr.msk.bf16.mxu1 %vm351_vm1, %v331_v38  ;;  %v2636_v63 = vpack.c.bf16 %v5695_v59, %v5694_v58  ;;  %v5696_v2 = vld [vmem:[%s7583_s5 + $0xd6] sm:$0xff]  ;;  %v7691_v4 = vld [vmem:[%s7583_s5 + $0xa1] sm:$0xff]  ;;  %v7694_v5 = vld [vmem:[%s7583_s5 + $0xa9] sm:$0xff]  ;;  %v336_v8 = vpack.c.bf16 %v7685_v1, %v7682_v0 }
  0x25   : > { %6650 = vmatprep.mubr.msk.bf16.mxu0 %vm351_vm1, %v2632_v39  ;;  %v5698_v6 = vld [vmem:[%s7583_s5 + $0xe6] sm:$0xff]  ;;  %v5699_v7 = vld [vmem:[%s7583_s5 + $0xee] sm:$0xff]  ;;  %v2637_v9 = vpack.c.bf16 %v5697_v3, %v5696_v2  ;;  %v337_v10 = vpack.c.bf16 %v7694_v5, %v7691_v4  ;;  %v7709_v14 = vld [vmem:[%s7583_s5 + $0xb9] sm:$0xff]  ;;  %v3534_v2 = vpack.c.bf16 %v7634_v40, %v7620_v33 }
  0x26   : > { %v2638_v11 = vpack.c.bf16 %v5699_v7, %v5698_v6  ;;  %v7706_v12 = vld [vmem:[%s7583_s5 + $0xb1] sm:$0xff]  ;;  %v5701_v16 = vld [vmem:[%s7583_s5 + $0xfe] sm:$0xff]  ;;  %v7718_v18 = vld [vmem:[%s7583_s5 + $0xc9] sm:$0xff] }
  0x27   : > { %v5700_v15 = vld [vmem:[%s7583_s5 + $0xf6] sm:$0xff]  ;;  %v7715_v17 = vld [vmem:[%s7583_s5 + $0xc1] sm:$0xff]  ;;  %v5703_v20 = vld [vmem:[%s7583_s5 + $0x10e] sm:$0xff]  ;;  %v338_v21 = vpack.c.bf16 %v7709_v14, %v7706_v12 }
  0x28   : > { %v5702_v19 = vld [vmem:[%s7583_s5 + $0x106] sm:$0xff]  ;;  %v2639_v22 = vpack.c.bf16 %v5701_v16, %v5700_v15  ;;  %v339_v23 = vpack.c.bf16 %v7718_v18, %v7715_v17  ;;  %v7730_v25 = vld [vmem:[%s7583_s5 + $0xd1] sm:$0xff]  ;;  %v7733_v26 = vld [vmem:[%s7583_s5 + $0xd9] sm:$0xff]  ;;  %v3305_v15 = vsel %vm400_vm0, %v7610_v27, 0 }
  0x29   : > { %v2640_v24 = vpack.c.bf16 %v5703_v20, %v5702_v19  ;;  %v5704_v28 = vld [vmem:[%s7583_s5 + $0x116] sm:$0xff]  ;;  %v5705_v29 = vld [vmem:[%s7583_s5 + $0x11e] sm:$0xff]  ;;  %v7742_v31 = vld [vmem:[%s7583_s5 + $0xe9] sm:$0xff]  ;;  %v340_v35 = vpack.c.bf16 %v7733_v26, %v7730_v25  ;;  %v3535_v20 = vpack.c.bf16 %v7643_v44, %v7637_v41  ;;  %v3537_v44 = vpack.c.bf16 %v7667_v56, %v7661_v53 }
  0x2a   : > { %v7739_v30 = vld [vmem:[%s7583_s5 + $0xe1] sm:$0xff]  ;;  %v5707_v34 = vld [vmem:[%s7583_s5 + $0x12e] sm:$0xff]  ;;  %v2641_v36 = vpack.c.bf16 %v5705_v29, %v5704_v28  ;;  %v7757_v42 = vld [vmem:[%s7583_s5 + $0xf9] sm:$0xff]  ;;  %v7811_v29 = vpack.c.bf16 %v7658_v52, %v7646_v45 }
  0x2b   : > { %6379 = vmatmul.mubr.msk.bf16.gmra.mrb[8].mxu1 %vm351_vm1, %v332_v48  ;;  %v5706_v32 = vld [vmem:[%s7583_s5 + $0x126] sm:$0xff]  ;;  %v341_v37 = vpack.c.bf16 %v7742_v31, %v7739_v30  ;;  %v7754_v39 = vld [vmem:[%s7583_s5 + $0xf1] sm:$0xff]  ;;  %v5709_v46 = vld [vmem:[%s7583_s5 + $0x13e] sm:$0xff] }
  0x2c   : > { %6651 = vmatmul.mubr.msk.bf16.gmra.mrb[8].mxu0 %vm351_vm1, %v2633_v49  ;;  %6382 = vmatprep.mubr.msk.bf16.mxu1 %vm351_vm1, %v333_v50  ;;  %v2642_v38 = vpack.c.bf16 %v5707_v34, %v5706_v32  ;;  %v5708_v43 = vld [vmem:[%s7583_s5 + $0x136] sm:$0xff]  ;;  %v243_v47 = vld [vmem:[%s7583_s5] sm:$0xff]  ;;  %v244_v48 = vld [vmem:[%s7583_s5 + $0x8] sm:$0xff] }
  0x2d   : > { %6654 = vmatprep.mubr.msk.bf16.mxu0 %vm351_vm1, %v2634_v51  ;;  %v5730_v49 = vld [vmem:[%s7583_s5 + $0x47] sm:$0xff]  ;;  %v5731_v50 = vld [vmem:[%s7583_s5 + $0x4f] sm:$0xff]  ;;  %v342_v51 = vpack.c.bf16 %v7757_v42, %v7754_v39  ;;  %v2643_v54 = vpack.c.bf16 %v5709_v46, %v5708_v43  ;;  %v275_v55 = vpack.c.bf16 %v244_v48, %v243_v47  ;;  %v7789_v19 = vld [vmem:[%s8959_s1 + $0x18] sm:$0x3f]  }
  0x2e   : > { %v2930_v58 = vpack.c.bf16 %v5731_v50, %v5730_v49  ;;  %v245_v59 = vld [vmem:[%s7583_s5 + $0x10] sm:$0xff]  ;;  %v248_v3 = vld [vmem:[%s7583_s5 + $0x28] sm:$0xff]  ;;  %v5741_v46 = vld [vmem:[%s7583_s5 + $0x9f] sm:$0xff] }
  0x2f   : > { %v5734_v6 = vld [vmem:[%s7583_s5 + $0x67] sm:$0xff]  ;;  %v5735_v7 = vld [vmem:[%s7583_s5 + $0x6f] sm:$0xff]  ;;  %v5740_v43 = vld [vmem:[%s7583_s5 + $0x97] sm:$0xff] }
  0x30   : > { %v2932_v16 = vpack.c.bf16 %v5735_v7, %v5734_v6  ;;  %v249_v27 = vld [vmem:[%s7583_s5 + $0x30] sm:$0xff]  ;;  %v7807_v28 = vld [vmem:[%s7583_s5 + $0x48] sm:$0xff]  ;;  %v7834_v47 = vld [vmem:[%s7583_s5 + $0x60] sm:$0xff] }
  0x31   : > { %v5738_v32 = vld [vmem:[%s7583_s5 + $0x87] sm:$0xff]  ;;  %v5739_v34 = vld [vmem:[%s7583_s5 + $0x8f] sm:$0xff] }
  0x32   : > { %v2934_v52 = vpack.c.bf16 %v5739_v34, %v5738_v32  ;;  %v7837_v48 = vld [vmem:[%s7583_s5 + $0x68] sm:$0xff]  ;;  %v5424_v40 = vld [vmem:[%s7583_s5 + $0x33] sm:$0xff] }
  0x33   : > { %6383 = vmatmul.mubr.msk.bf16.gmra.mrb[12].mxu1 %vm351_vm1, %v334_v60  ;;  %v246_v60 = vld [vmem:[%s7583_s5 + $0x18] sm:$0xff]  ;;  %v5742_v49 = vld [vmem:[%s7583_s5 + $0xa7] sm:$0xff]  ;;  %v5743_v50 = vld [vmem:[%s7583_s5 + $0xaf] sm:$0xff] }
  0x34   : > { %6655 = vmatmul.mubr.msk.bf16.gmra.mrb[12].mxu0 %vm351_vm1, %v2635_v61  ;;  %6386 = vmatprep.mubr.msk.bf16.mxu1 %vm351_vm1, %v335_v62  ;;  %v5732_v61 = vld [vmem:[%s7583_s5 + $0x57] sm:$0xff]  ;;  %v5733_v62 = vld [vmem:[%s7583_s5 + $0x5f] sm:$0xff]  ;;  %v5746_v6 = vld [vmem:[%s7583_s5 + $0xc7] sm:$0xff] }
  0x35   : > { %6658 = vmatprep.mubr.msk.bf16.mxu0 %vm351_vm1, %v2636_v63  ;;  %v247_v63 = vld [vmem:[%s7583_s5 + $0x20] sm:$0xff]  ;;  %v5747_v7 = vld [vmem:[%s7583_s5 + $0xcf] sm:$0xff]  ;;  %v8154_v33 = vld [vmem:[%s8959_s1 + $0x68] sm:$0x3f]  }
  0x36   : > { %v5751_v32 = vld [vmem:[%s7583_s5 + $0xef] sm:$0xff]  ;;  %v5430_v53 = vld [vmem:[%s7583_s5 + $0x63] sm:$0xff] }
  0x3b   : > { %6387 = vmatmul.mubr.msk.bf16.gmra.mrb[16].mxu1 %vm351_vm1, %v336_v8  ;;  %v276_v8 = vpack.c.bf16 %v246_v60, %v245_v59  ;;  %v7849_v59 = vld [vmem:[%s7583_s5 + $0x70] sm:$0xff]  ;;  %v7852_v60 = vld [vmem:[%s7583_s5 + $0x78] sm:$0xff] }
  0x3c   : > { %6659 = vmatmul.mubr.msk.bf16.gmra.mrb[16].mxu0 %vm351_vm1, %v2637_v9  ;;  %6390 = vmatprep.mubr.msk.bf16.mxu1 %vm351_vm1, %v337_v10  ;;  %v2931_v9 = vpack.c.bf16 %v5733_v62, %v5732_v61  ;;  %v889_v10 = vsel %vm400_vm0, %v7594_v13, 0  ;;  %v7797_v13 = vld [vmem:[%s8959_s1 + $0x58] sm:$0x3f]   ;;  %v5745_v62 = vld [vmem:[%s7583_s5 + $0xbf] sm:$0xff] }
  0x3d   : > { %6662 = vmatprep.mubr.msk.bf16.mxu0 %vm351_vm1, %v2638_v11  ;;  %v277_v11 = vpack.c.bf16 %v248_v3, %v247_v63  ;;  %v5744_v61 = vld [vmem:[%s7583_s5 + $0xb7] sm:$0xff]  ;;  %v7858_v63 = vld [vmem:[%s7583_s5 + $0x80] sm:$0xff]  ;;  %v7861_v3 = vld [vmem:[%s7583_s5 + $0x88] sm:$0xff] }
  0x43   : > { %6391 = vmatmul.mubr.msk.bf16.gmra.mrb[20].mxu1 %vm351_vm1, %v338_v21  ;;  %v250_v21 = vld [vmem:[%s7583_s5 + $0x38] sm:$0xff] }
  0x44   : > { %6663 = vmatmul.mubr.msk.bf16.gmra.mrb[20].mxu0 %vm351_vm1, %v2639_v22  ;;  %6394 = vmatprep.mubr.msk.bf16.mxu1 %vm351_vm1, %v339_v23  ;;  %v5736_v22 = vld [vmem:[%s7583_s5 + $0x77] sm:$0xff]  ;;  %v5737_v23 = vld [vmem:[%s7583_s5 + $0x7f] sm:$0xff] }
  0x45   : > { %6666 = vmatprep.mubr.msk.bf16.mxu0 %vm351_vm1, %v2640_v24  ;;  %v251_v24 = vld [vmem:[%s7583_s5 + $0x40] sm:$0xff] }
  0x46   : > { %v279_v45 = vpack.c.bf16 %v7807_v28, %v251_v24  ;;  %v5750_v24 = vld [vmem:[%s7583_s5 + $0xe7] sm:$0xff] }
  0x4b   : > { %6395 = vmatmul.mubr.msk.bf16.gmra.mrb[24].mxu1 %vm351_vm1, %v340_v35  ;;  %v278_v35 = vpack.c.bf16 %v250_v21, %v249_v27  ;;  %v5748_v27 = vld [vmem:[%s7583_s5 + $0xd7] sm:$0xff]  ;;  %v5749_v21 = vld [vmem:[%s7583_s5 + $0xdf] sm:$0xff] }
  0x4c   : > { %6667 = vmatmul.mubr.msk.bf16.gmra.mrb[24].mxu0 %vm351_vm1, %v2641_v36  ;;  %6398 = vmatprep.mubr.msk.bf16.mxu1 %vm351_vm1, %v341_v37  ;;  %v2933_v36 = vpack.c.bf16 %v5737_v23, %v5736_v22  ;;  %v7825_v37 = vld [vmem:[%s7583_s5 + $0x50] sm:$0xff]  ;;  %v7882_v22 = vld [vmem:[%s7583_s5 + $0xa0] sm:$0xff]  ;;  %v7885_v23 = vld [vmem:[%s7583_s5 + $0xa8] sm:$0xff] }
  0x4d   : > { %6670 = vmatprep.mubr.msk.bf16.mxu0 %vm351_vm1, %v2642_v38  ;;  %v7828_v38 = vld [vmem:[%s7583_s5 + $0x58] sm:$0xff] }
  0x53   : > { %6399 = vmatmul.mubr.msk.bf16.gmra.mrb[28].mxu1 %vm351_vm1, %v342_v51  ;;  %v280_v51 = vpack.c.bf16 %v7828_v38, %v7825_v37 }
  0x54   : > { %6671 = vmatmul.mubr.msk.bf16.gmra.mrb[28].mxu0 %vm351_vm1, %v2643_v54  ;;  %6404 = vmatprep.mubr.msk.bf16.mxu1 %vm351_vm1, %v275_v55  ;;  %v2935_v54 = vpack.c.bf16 %v5741_v46, %v5740_v43  ;;  %v281_v55 = vpack.c.bf16 %v7837_v48, %v7834_v47  ;;  %v7900_v43 = vld [vmem:[%s7583_s5 + $0xb8] sm:$0xff] }
  0x55   : > { %6676 = vmatprep.mubr.msk.bf16.mxu0 %vm351_vm1, %v2930_v58  ;;  %v2936_v58 = vpack.c.bf16 %v5743_v50, %v5742_v49  ;;  %v5752_v46 = vld [vmem:[%s7583_s5 + $0xf7] sm:$0xff]  ;;  %v5753_v49 = vld [vmem:[%s7583_s5 + $0xff] sm:$0xff] }
  0x56   : > { %v7906_v50 = vld [vmem:[%s7583_s5 + $0xc0] sm:$0xff] }
  0x5b   : > { %6405 = vmatmul.mubr.msk.bf16.vlgmr.msra.gmra.mrb[0].mxu1 %vm351_vm1, %v276_v8  ;;  %v282_v8 = vpack.c.bf16 %v7852_v60, %v7849_v59 }
  0x5c   : > { %6437 = vmatpush3.bf16.msra.mxu1 %v889_v10  ;;  %6677 = vmatmul.mubr.msk.bf16.vlgmr.msra.gmra.mrb[0].mxu0 %vm351_vm1, %v2931_v9  ;;  %v2937_v9 = vpack.c.bf16 %v5745_v62, %v5744_v61  ;;  %v283_v10 = vpack.c.bf16 %v7861_v3, %v7858_v63  ;;  %v2941_v61 = vpack.c.bf16 %v5753_v49, %v5752_v46  ;;  %v7948_v46 = vld [vmem:[%s7583_s5 + $0xf8] sm:$0xff] }
  0x5d   : > { %6709 = vmatpush3.bf16.msra.mxu0 %v3305_v15  ;;  %6408 = vmatprep.mubr.msk.bf16.mxu1 %vm351_vm1, %v277_v11  ;;  %v2938_v11 = vpack.c.bf16 %v5747_v7, %v5746_v6  ;;  %v7873_v15 = vld [vmem:[%s7583_s5 + $0x90] sm:$0xff] }
  0x5e   : > { %6680 = vmatprep.mubr.msk.bf16.mxu0 %vm351_vm1, %v2932_v16  ;;  %7395 = vmatprep.subr.msk.bf16.mxu1 %vm400_vm0, %v7789_v19  ;;  %v7876_v16 = vld [vmem:[%s7583_s5 + $0x98] sm:$0xff]  ;;  %v7921_v7 = vld [vmem:[%s7583_s5 + $0xd0] sm:$0xff] }
  0x5f   : > { %7403 = vmatprep.subr.msk.bf16.mxu0 %vm400_vm0, %v7797_v13  ;;  %v284_v34 = vpack.c.bf16 %v7876_v16, %v7873_v15  ;;  %v5760_v49 = vld [vmem:[%s7583_s5 + $0x137] sm:$0xff] }
  0x63   : > { %6409 = vmatmul.mubr.msk.bf16.gmra.mrb[4].mxu1 %vm351_vm1, %v278_v35  ;;  %v2939_v35 = vpack.c.bf16 %v5749_v21, %v5748_v27  ;;  %v7933_v27 = vld [vmem:[%s7583_s5 + $0xe8] sm:$0xff] }
  0x64   : > { %6681 = vmatmul.mubr.msk.bf16.gmra.mrb[4].mxu0 %vm351_vm1, %v2933_v36  ;;  %6412 = vmatprep.mubr.msk.bf16.mxu1 %vm351_vm1, %v279_v45  ;;  %v285_v36 = vpack.c.bf16 %v7885_v23, %v7882_v22  ;;  %v2940_v45 = vpack.c.bf16 %v5751_v32, %v5750_v24  ;;  %v5758_v21 = vld [vmem:[%s7583_s5 + $0x127] sm:$0xff]  ;;  %v5759_v24 = vld [vmem:[%s7583_s5 + $0x12f] sm:$0xff] }
  0x65   : > { %6684 = vmatprep.mubr.msk.bf16.mxu0 %vm351_vm1, %v2934_v52  ;;  %v7897_v52 = vld [vmem:[%s7583_s5 + $0xb0] sm:$0xff] }
  0x6b   : > { %6413 = vmatmul.mubr.msk.bf16.gmra.mrb[8].mxu1 %vm351_vm1, %v280_v51  ;;  %v7909_v51 = vld [vmem:[%s7583_s5 + $0xc8] sm:$0xff] }
  0x6c   : > { %6685 = vmatmul.mubr.msk.bf16.gmra.mrb[8].mxu0 %vm351_vm1, %v2935_v54  ;;  %6416 = vmatprep.mubr.msk.bf16.mxu1 %vm351_vm1, %v281_v55  ;;  %v5754_v54 = vld [vmem:[%s7583_s5 + $0x107] sm:$0xff]  ;;  %v5755_v55 = vld [vmem:[%s7583_s5 + $0x10f] sm:$0xff]  ;;  %v287_v62 = vpack.c.bf16 %v7909_v51, %v7906_v50 }
  0x6d   : > { %6688 = vmatprep.mubr.msk.bf16.mxu0 %vm351_vm1, %v2936_v58  ;;  %v286_v58 = vpack.c.bf16 %v7900_v43, %v7897_v52  ;;  %v2942_v6 = vpack.c.bf16 %v5755_v55, %v5754_v54  ;;  %v5761_v54 = vld [vmem:[%s7583_s5 + $0x13f] sm:$0xff] }
  0x6e   : > { %v5366_v55 = vld [vmem:[%s7583_s5 + $0x2] sm:$0xff] }
  0x73   : > { %6417 = vmatmul.mubr.msk.bf16.gmra.mrb[12].mxu1 %vm351_vm1, %v282_v8  ;;  %v7924_v8 = vld [vmem:[%s7583_s5 + $0xd8] sm:$0xff] }
  0x74   : > { %6689 = vmatmul.mubr.msk.bf16.gmra.mrb[12].mxu0 %vm351_vm1, %v2937_v9  ;;  %6420 = vmatprep.mubr.msk.bf16.mxu1 %vm351_vm1, %v283_v10  ;;  %v5756_v9 = vld [vmem:[%s7583_s5 + $0x117] sm:$0xff]  ;;  %v5757_v10 = vld [vmem:[%s7583_s5 + $0x11f] sm:$0xff]  ;;  %v288_v32 = vpack.c.bf16 %v7924_v8, %v7921_v7 }
  0x75   : > { %6692 = vmatprep.mubr.msk.bf16.mxu0 %vm351_vm1, %v2938_v11  ;;  %v7930_v11 = vld [vmem:[%s7583_s5 + $0xe0] sm:$0xff] }
  0x7b   : > { %6421 = vmatmul.mubr.msk.bf16.gmra.mrb[16].mxu1 %vm351_vm1, %v284_v34  ;;  %v2943_v34 = vpack.c.bf16 %v5757_v10, %v5756_v9  ;;  %v3232_v9 = vpack.c.bf16 %v7825_v37, %v7807_v28  ;;  %v5368_v10 = vld [vmem:[%s7583_s5 + $0x12] sm:$0xff]  ;;  %v3233_v28 = vpack.c.bf16 %v7834_v47, %v7828_v38  ;;  %v1191_v37 = vsel %vm400_vm0, %v7789_v19, 0  ;;  %v7984_v38 = vld [vmem:[%s8959_s1 + $0x60] sm:$0x3f]  }
  0x7c   : > { %6693 = vmatmul.mubr.msk.bf16.gmra.mrb[16].mxu0 %vm351_vm1, %v2939_v35  ;;  %6424 = vmatprep.mubr.msk.bf16.mxu1 %vm351_vm1, %v285_v36  ;;  %v289_v35 = vpack.c.bf16 %v7933_v27, %v7930_v11  ;;  %v2944_v36 = vpack.c.bf16 %v5759_v24, %v5758_v21  ;;  %v5369_v21 = vld [vmem:[%s7583_s5 + $0x1a] sm:$0xff]  ;;  %v5370_v24 = vld [vmem:[%s7583_s5 + $0x22] sm:$0xff]  ;;  %v5372_v19 = vld [vmem:[%s7583_s5 + $0x32] sm:$0xff] }
  0x7d   : > { %6696 = vmatprep.mubr.msk.bf16.mxu0 %vm351_vm1, %v2940_v45  ;;  %v7945_v45 = vld [vmem:[%s7583_s5 + $0xf0] sm:$0xff]  ;;  %v5374_v47 = vld [vmem:[%s7583_s5 + $0x42] sm:$0xff] }
  0x83   : > { %6425 = vmatmul.mubr.msk.bf16.gmra.mrb[20].mxu1 %vm351_vm1, %v286_v58  ;;  %v5367_v58 = vld [vmem:[%s7583_s5 + $0xa] sm:$0xff] }
  0x84   : > { %6697 = vmatmul.mubr.msk.bf16.gmra.mrb[20].mxu0 %vm351_vm1, %v2941_v61  ;;  %6428 = vmatprep.mubr.msk.bf16.mxu1 %vm351_vm1, %v287_v62  ;;  %v290_v61 = vpack.c.bf16 %v7948_v46, %v7945_v45  ;;  %v2945_v62 = vpack.c.bf16 %v5761_v54, %v5760_v49  ;;  %v3234_v49 = vpack.c.bf16 %v7849_v59, %v7837_v48  ;;  %v7978_v54 = vld [vmem:[%s8959_s1 + $0x20] sm:$0x3f]   ;;  %v5375_v48 = vld [vmem:[%s7583_s5 + $0x4a] sm:$0xff] }
  0x85   : > { %6700 = vmatprep.mubr.msk.bf16.mxu0 %vm351_vm1, %v2942_v6  ;;  %v816_v6 = vpack.c.bf16 %v5367_v58, %v5366_v55  ;;  %v3235_v55 = vpack.c.bf16 %v7858_v63, %v7852_v60  ;;  %v820_v58 = vpack.c.bf16 %v5375_v48, %v5374_v47  ;;  %v8009_v60 = vld [vmem:[%s7583_s5 + $0x6a] sm:$0xff] }
  0x8b   : > { %6429 = vmatmul.mubr.msk.bf16.gmra.mrb[24].mxu1 %vm351_vm1, %v288_v32  ;;  %v5371_v32 = vld [vmem:[%s7583_s5 + $0x2a] sm:$0xff] }
  0x8c   : > { %6701 = vmatmul.mubr.msk.bf16.gmra.mrb[24].mxu0 %vm351_vm1, %v2943_v34  ;;  %6432 = vmatprep.mubr.msk.bf16.mxu1 %vm351_vm1, %v289_v35  ;;  %v817_v34 = vpack.c.bf16 %v5369_v21, %v5368_v10  ;;  %v818_v35 = vpack.c.bf16 %v5371_v32, %v5370_v24  ;;  %v3238_v10 = vpack.c.bf16 %v7897_v52, %v7885_v23  ;;  %v8020_v21 = vld [vmem:[%s7583_s5 + $0x72] sm:$0xff]  ;;  %v8023_v24 = vld [vmem:[%s7583_s5 + $0x7a] sm:$0xff] }
  0x8d   : > { %6704 = vmatprep.mubr.msk.bf16.mxu0 %vm351_vm1, %v2944_v36  ;;  %v3607_v36 = vsel %vm400_vm0, %v7797_v13, 0  ;;  %v5373_v13 = vld [vmem:[%s7583_s5 + $0x3a] sm:$0xff]  ;;  %v823_v23 = vpack.c.bf16 %v8023_v24, %v8020_v21  ;;  %v3239_v52 = vpack.c.bf16 %v7906_v50, %v7900_v43  ;;  %v8051_v43 = vld [vmem:[%s7583_s5 + $0xa2] sm:$0xff]  ;;  %v8054_v50 = vld [vmem:[%s7583_s5 + $0xaa] sm:$0xff] }
  0x8e   : > { %v819_v59 = vpack.c.bf16 %v5373_v13, %v5372_v19  ;;  %v8071_v19 = vld [vmem:[%s7583_s5 + $0xba] sm:$0xff]  ;;  %v5807_v13 = vld [vmem:[%s7583_s5 + $0x110] sm:$0xff] }
  0x93   : > { %6433 = vmatmul.mubr.msk.bf16.gmra.mrb[28].mxu1 %vm351_vm1, %v290_v61  ;;  %v3236_v61 = vpack.c.bf16 %v7873_v15, %v7861_v3  ;;  %v3237_v3 = vpack.c.bf16 %v7882_v22, %v7876_v16  ;;  %v8027_v16 = vld [vmem:[%s7583_s5 + $0x82] sm:$0xff]  ;;  %v8030_v22 = vld [vmem:[%s7583_s5 + $0x8a] sm:$0xff] }
  0x94   : > { %6705 = vmatmul.mubr.msk.bf16.gmra.mrb[28].mxu0 %vm351_vm1, %v2945_v62  ;;  %6438 = vmatprep.mubr.msk.bf16.mxu1 %vm351_vm1, %v816_v6  ;;  %v5376_v62 = vld [vmem:[%s7583_s5 + $0x52] sm:$0xff]  ;;  %v5377_v6 = vld [vmem:[%s7583_s5 + $0x5a] sm:$0xff]  ;;  %v824_v32 = vpack.c.bf16 %v8030_v22, %v8027_v16 }
  0x95   : > { %6710 = vmatprep.mubr.msk.bf16.mxu0 %vm351_vm1, %v3232_v9  ;;  %v5378_v9 = vld [vmem:[%s7583_s5 + $0x62] sm:$0xff]  ;;  %v821_v63 = vpack.c.bf16 %v5377_v6, %v5376_v62  ;;  %v5808_v62 = vld [vmem:[%s7583_s5 + $0x118] sm:$0xff] }
  0x96   : > { %v822_v15 = vpack.c.bf16 %v8009_v60, %v5378_v9  ;;  %v8101_v6 = vld [vmem:[%s7583_s5 + $0xe2] sm:$0xff]  ;;  %v8104_v9 = vld [vmem:[%s7583_s5 + $0xea] sm:$0xff] }
  0x9b   : > { %6439 = vmatmul.mubr.msk.bf16.vlgmr.msra.gmra.mrb[0].mxu1 %vm351_vm1, %v817_v34  ;;  %v3240_v34 = vpack.c.bf16 %v7921_v7, %v7909_v51  ;;  %v3241_v7 = vpack.c.bf16 %v7930_v11, %v7924_v8  ;;  %v5805_v8 = vld [vmem:[%s7583_s5 + $0x100] sm:$0xff] }
  0x9c   : > { %6471 = vmatpush3.bf16.msra.mxu1 %v1191_v37  ;;  %6711 = vmatmul.mubr.msk.bf16.vlgmr.msra.gmra.mrb[0].mxu0 %vm351_vm1, %v3233_v28  ;;  %v8044_v28 = vld [vmem:[%s7583_s5 + $0x92] sm:$0xff]  ;;  %v8047_v37 = vld [vmem:[%s7583_s5 + $0x9a] sm:$0xff]  ;;  %v8076_v11 = vld [vmem:[%s7583_s5 + $0xc2] sm:$0xff]  ;;  %v3243_v48 = vpack.c.bf16 %v5805_v8, %v7948_v46 }
  0x9d   : > { %6743 = vmatpush3.bf16.msra.mxu0 %v3607_v36  ;;  %6442 = vmatprep.mubr.msk.bf16.mxu1 %vm351_vm1, %v818_v35  ;;  %v825_v51 = vpack.c.bf16 %v8047_v37, %v8044_v28  ;;  %v826_v35 = vpack.c.bf16 %v8054_v50, %v8051_v43  ;;  %v3242_v36 = vpack.c.bf16 %v7945_v45, %v7933_v27  ;;  %v8079_v27 = vld [vmem:[%s7583_s5 + $0xca] sm:$0xff]  ;;  %v5809_v46 = vld [vmem:[%s7583_s5 + $0x120] sm:$0xff] }
  0x9e   : > { %6714 = vmatprep.mubr.msk.bf16.mxu0 %vm351_vm1, %v3234_v49  ;;  %7396 = vmatprep.subr.msk.bf16.mxu1 %vm400_vm0, %v7978_v54  ;;  %v8068_v49 = vld [vmem:[%s7583_s5 + $0xb2] sm:$0xff]  ;;  %v5806_v45 = vld [vmem:[%s7583_s5 + $0x108] sm:$0xff] }
  0x9f   : > { %7404 = vmatprep.subr.msk.bf16.mxu0 %vm400_vm0, %v7984_v38  ;;  %v827_v47 = vpack.c.bf16 %v8071_v19, %v8068_v49 }
  0xa3   : > { %6443 = vmatmul.mubr.msk.bf16.gmra.mrb[4].mxu1 %vm351_vm1, %v819_v59  ;;  %v828_v59 = vpack.c.bf16 %v8079_v27, %v8076_v11 }
  0xa4   : > { %6715 = vmatmul.mubr.msk.bf16.gmra.mrb[4].mxu0 %vm351_vm1, %v3235_v55  ;;  %6446 = vmatprep.mubr.msk.bf16.mxu1 %vm351_vm1, %v820_v58  ;;  %v3244_v55 = vpack.c.bf16 %v5807_v13, %v5806_v45  ;;  %v8092_v58 = vld [vmem:[%s7583_s5 + $0xd2] sm:$0xff] }
  0xa5   : > { %6718 = vmatprep.mubr.msk.bf16.mxu0 %vm351_vm1, %v3236_v61  ;;  %v8095_v61 = vld [vmem:[%s7583_s5 + $0xda] sm:$0xff] }
  0xab   : > { %6447 = vmatmul.mubr.msk.bf16.gmra.mrb[8].mxu1 %vm351_vm1, %v821_v63  ;;  %v5810_v63 = vld [vmem:[%s7583_s5 + $0x128] sm:$0xff] }
  0xac   : > { %6719 = vmatmul.mubr.msk.bf16.gmra.mrb[8].mxu0 %vm351_vm1, %v3237_v3  ;;  %6450 = vmatprep.mubr.msk.bf16.mxu1 %vm351_vm1, %v822_v15  ;;  %v5811_v3 = vld [vmem:[%s7583_s5 + $0x130] sm:$0xff]  ;;  %v829_v15 = vpack.c.bf16 %v8095_v61, %v8092_v58 }
  0xad   : > { %6722 = vmatprep.mubr.msk.bf16.mxu0 %vm351_vm1, %v3238_v10  ;;  %v3245_v10 = vpack.c.bf16 %v5809_v46, %v5808_v62  ;;  %v1493_v46 = vsel %vm400_vm0, %v7978_v54, 0  ;;  %v5426_v54 = vld [vmem:[%s7583_s5 + $0x43] sm:$0xff] }
  0xb3   : > { %6451 = vmatmul.mubr.msk.bf16.gmra.mrb[12].mxu1 %vm351_vm1, %v823_v23  ;;  %v830_v23 = vpack.c.bf16 %v8104_v9, %v8101_v6 }
  0xb4   : > { %6723 = vmatmul.mubr.msk.bf16.gmra.mrb[12].mxu0 %vm351_vm1, %v3239_v52  ;;  %6454 = vmatprep.mubr.msk.bf16.mxu1 %vm351_vm1, %v824_v32  ;;  %v3246_v52 = vpack.c.bf16 %v5811_v3, %v5810_v63  ;;  %v8116_v32 = vld [vmem:[%s7583_s5 + $0xf2] sm:$0xff]  ;;  %v3909_v3 = vsel %vm400_vm0, %v7984_v38, 0 }
  0xb5   : > { %6726 = vmatprep.mubr.msk.bf16.mxu0 %vm351_vm1, %v3240_v34  ;;  %v8119_v34 = vld [vmem:[%s7583_s5 + $0xfa] sm:$0xff]  ;;  %v5427_v38 = vld [vmem:[%s7583_s5 + $0x4b] sm:$0xff] }
  0xb6   : > { %v831_v8 = vpack.c.bf16 %v8119_v34, %v8116_v32 }
  0xbb   : > { %6455 = vmatmul.mubr.msk.bf16.gmra.mrb[16].mxu1 %vm351_vm1, %v825_v51  ;;  %v5812_v51 = vld [vmem:[%s7583_s5 + $0x138] sm:$0xff] }
  0xbc   : > { %6727 = vmatmul.mubr.msk.bf16.gmra.mrb[16].mxu0 %vm351_vm1, %v3241_v7  ;;  %6458 = vmatprep.mubr.msk.bf16.mxu1 %vm351_vm1, %v826_v35  ;;  %v5813_v7 = vld [vmem:[%s7583_s5 + $0x140] sm:$0xff] }
  0xbd   : > { %6730 = vmatprep.mubr.msk.bf16.mxu0 %vm351_vm1, %v3242_v36  ;;  %v5418_v35 = vld [vmem:[%s7583_s5 + $0x3] sm:$0xff]  ;;  %v5419_v36 = vld [vmem:[%s7583_s5 + $0xb] sm:$0xff]  ;;  %v3247_v45 = vpack.c.bf16 %v5813_v7, %v5812_v51  ;;  %v3539_v7 = vpack.c.bf16 %v7691_v4, %v7685_v1  ;;  %v8210_v1 = vld [vmem:[%s7583_s5 + $0x7b] sm:$0xff] }
  0xbe   : > { %v1118_v13 = vpack.c.bf16 %v5419_v36, %v5418_v35  ;;  %v8190_v51 = vld [vmem:[%s7583_s5 + $0x6b] sm:$0xff]  ;;  %v3540_v36 = vpack.c.bf16 %v7706_v12, %v7694_v5 }
  0xbf   : > { %v8197_v35 = vpack.c.bf16 %v8190_v51, %v5430_v53  ;;  %v8217_v5 = vld [vmem:[%s7583_s5 + $0x8b] sm:$0xff] }
  0xc3   : > { %6459 = vmatmul.mubr.msk.bf16.gmra.mrb[20].mxu1 %vm351_vm1, %v827_v47  ;;  %v5420_v47 = vld [vmem:[%s7583_s5 + $0x13] sm:$0xff] }
  0xc4   : > { %6731 = vmatmul.mubr.msk.bf16.gmra.mrb[20].mxu0 %vm351_vm1, %v3243_v48  ;;  %6462 = vmatprep.mubr.msk.bf16.mxu1 %vm351_vm1, %v828_v59  ;;  %v5421_v48 = vld [vmem:[%s7583_s5 + $0x1b] sm:$0xff]  ;;  %v5422_v59 = vld [vmem:[%s7583_s5 + $0x23] sm:$0xff] }
  0xc5   : > { %6734 = vmatprep.mubr.msk.bf16.mxu0 %vm351_vm1, %v3244_v55  ;;  %v5423_v55 = vld [vmem:[%s7583_s5 + $0x2b] sm:$0xff]  ;;  %v1119_v62 = vpack.c.bf16 %v5421_v48, %v5420_v47  ;;  %v3541_v47 = vpack.c.bf16 %v7715_v17, %v7709_v14  ;;  %v8240_v14 = vld [vmem:[%s7583_s5 + $0x9b] sm:$0xff] }
  0xc6   : > { %v8141_v63 = vpack.c.bf16 %v5423_v55, %v5422_v59  ;;  %v3542_v59 = vpack.c.bf16 %v7730_v25, %v7718_v18  ;;  %v8237_v55 = vld [vmem:[%s7583_s5 + $0x93] sm:$0xff]  ;;  %v8244_v18 = vld [vmem:[%s7583_s5 + $0xa3] sm:$0xff] }
  0xcb   : > { %6463 = vmatmul.mubr.msk.bf16.gmra.mrb[24].mxu1 %vm351_vm1, %v829_v15  ;;  %v8148_v15 = vld [vmem:[%s8959_s1 + $0x28] sm:$0x3f]  }
  0xcc   : > { %6735 = vmatmul.mubr.msk.bf16.gmra.mrb[24].mxu0 %vm351_vm1, %v3245_v10  ;;  %6466 = vmatprep.mubr.msk.bf16.mxu1 %vm351_vm1, %v830_v23  ;;  %v3538_v10 = vpack.c.bf16 %v7682_v0, %v7670_v57  ;;  %v5428_v23 = vld [vmem:[%s7583_s5 + $0x53] sm:$0xff] }
  0xcd   : > { %6738 = vmatprep.mubr.msk.bf16.mxu0 %vm351_vm1, %v3246_v52  ;;  %v5429_v52 = vld [vmem:[%s7583_s5 + $0x5b] sm:$0xff] }
  0xce   : > { %v8192_v57 = vpack.c.bf16 %v5429_v52, %v5428_v23  ;;  %v5859_v23 = vld [vmem:[%s7583_s5 + $0x111] sm:$0xff] }
  0xd3   : > { %6467 = vmatmul.mubr.msk.bf16.gmra.mrb[28].mxu1 %vm351_vm1, %v831_v8  ;;  %v8207_v8 = vld [vmem:[%s7583_s5 + $0x73] sm:$0xff] }
  0xd4   : > { %6739 = vmatmul.mubr.msk.bf16.gmra.mrb[28].mxu0 %vm351_vm1, %v3247_v45  ;;  %6472 = vmatprep.mubr.msk.bf16.mxu1 %vm351_vm1, %v1118_v13  ;;  %v8214_v45 = vld [vmem:[%s7583_s5 + $0x83] sm:$0xff]  ;;  %v8221_v13 = vpack.c.bf16 %v8210_v1, %v8207_v8 }
  0xd5   : > { %6744 = vmatprep.mubr.msk.bf16.mxu0 %vm351_vm1, %v3534_v2  ;;  %v5425_v2 = vld [vmem:[%s7583_s5 + $0x3b] sm:$0xff]  ;;  %v8227_v48 = vpack.c.bf16 %v8217_v5, %v8214_v45 }
  0xd6   : > { %v8170_v41 = vpack.c.bf16 %v5425_v2, %v5424_v40  ;;  %v3544_v2 = vpack.c.bf16 %v7754_v39, %v7742_v31  ;;  %v8277_v31 = vld [vmem:[%s7583_s5 + $0xc3] sm:$0xff] }
  0xd7   : > { %8975 = vst [vmem:[#allocation5_spill] sm:$0xff] %v8277_v31 }
  0xdb   : > { %6473 = vmatmul.mubr.msk.bf16.vlgmr.msra.gmra.mrb[0].mxu1 %vm351_vm1, %v1119_v62  ;;  %v8247_v62 = vld [vmem:[%s7583_s5 + $0xab] sm:$0xff] }
  0xdc   : > { %6505 = vmatpush3.bf16.msra.mxu1 %v1493_v46  ;;  %6745 = vmatmul.mubr.msk.bf16.vlgmr.msra.gmra.mrb[0].mxu0 %vm351_vm1, %v3535_v20  ;;  %v8176_v20 = vpack.c.bf16 %v5427_v38, %v5426_v54  ;;  %8972 = vst [vmem:[#allocation2_spill] sm:$0xff] %v8247_v62  ;;  %v8251_v46 = vpack.c.bf16 %v8240_v14, %v8237_v55  ;;  %v8267_v54 = vld [vmem:[%s7583_s5 + $0xb3] sm:$0xff]  ;;  %v8274_v38 = vld [vmem:[%s7583_s5 + $0x101] sm:$0xff] }
  0xdd   : > { %6777 = vmatpush3.bf16.msra.mxu0 %v3909_v3  ;;  %6476 = vmatprep.mubr.msk.bf16.mxu1 %vm351_vm1, %v8141_v63  ;;  %v3543_v3 = vpack.c.bf16 %v7739_v30, %v7733_v26  ;;  %v8257_v40 = vpack.c.bf16 %v8247_v62, %v8244_v18  ;;  %8973 = vst [vmem:[#allocation3_spill] sm:$0xff] %v8267_v54  ;;  %v8270_v26 = vld [vmem:[%s7583_s5 + $0xbb] sm:$0xff] }
  0xde   : > { %6748 = vmatprep.mubr.msk.bf16.mxu0 %vm351_vm1, %v7811_v29  ;;  %7397 = vmatprep.subr.msk.bf16.mxu1 %vm400_vm0, %v8148_v15  ;;  %8974 = vst [vmem:[#allocation4_spill] sm:$0xff] %v8270_v26  ;;  %v8286_v52 = vpack.c.bf16 %v8270_v26, %v8267_v54  ;;  %v3545_v53 = vpack.c.bf16 %v8274_v38, %v7757_v42  ;;  %v5860_v42 = vld [vmem:[%s7583_s5 + $0x119] sm:$0xff] }
  0xdf   : > { %7405 = vmatprep.subr.msk.bf16.mxu0 %vm400_vm0, %v8154_v33 }
  0xe3   : > { %6477 = vmatmul.mubr.msk.bf16.gmra.mrb[4].mxu1 %vm351_vm1, %v8170_v41 }
  0xe4   : > { %6749 = vmatmul.mubr.msk.bf16.gmra.mrb[4].mxu0 %vm351_vm1, %v3537_v44  ;;  %6480 = vmatprep.mubr.msk.bf16.mxu1 %vm351_vm1, %v8176_v20  ;;  %v8280_v44 = vld [vmem:[%s7583_s5 + $0xcb] sm:$0xff] }
  0xe5   : > { %6752 = vmatprep.mubr.msk.bf16.mxu0 %vm351_vm1, %v3538_v10  ;;  %8976 = vst [vmem:[#allocation6_spill] sm:$0xff] %v8280_v44  ;;  %v5858_v10 = vld [vmem:[%s7583_s5 + $0x109] sm:$0xff] }
  0xeb   : > { %6481 = vmatmul.mubr.msk.bf16.gmra.mrb[8].mxu1 %vm351_vm1, %v8192_v57 }
  0xec   : > { %6753 = vmatmul.mubr.msk.bf16.gmra.mrb[8].mxu0 %vm351_vm1, %v3539_v7  ;;  %6484 = vmatprep.mubr.msk.bf16.mxu1 %vm351_vm1, %v8197_v35  ;;  %v8292_v7 = vpack.c.bf16 %v8280_v44, %v8277_v31 }
  0xed   : > { %6756 = vmatprep.mubr.msk.bf16.mxu0 %vm351_vm1, %v3540_v36  ;;  %v8294_v36 = vpack.c.bf16 %v5859_v23, %v5858_v10  ;;  %v8315_v10 = vld [vmem:[%s7583_s5 + $0xeb] sm:$0xff] }
  0xee   : > { %8980 = vst [vmem:[#allocation10_spill] sm:$0xff] %v8315_v10  ;;  %v5862_v23 = vld [vmem:[%s7583_s5 + $0x129] sm:$0xff] }
  0xf3   : > { %6485 = vmatmul.mubr.msk.bf16.gmra.mrb[12].mxu1 %vm351_vm1, %v8221_v13 }
  0xf4   : > { %6757 = vmatmul.mubr.msk.bf16.gmra.mrb[12].mxu0 %vm351_vm1, %v3541_v47  ;;  %6488 = vmatprep.mubr.msk.bf16.mxu1 %vm351_vm1, %v8227_v48  ;;  %v8302_v47 = vld [vmem:[%s7583_s5 + $0xd3] sm:$0xff] }
  0xf5   : > { %6760 = vmatprep.mubr.msk.bf16.mxu0 %vm351_vm1, %v3542_v59  ;;  %8977 = vst [vmem:[#allocation7_spill] sm:$0xff] %v8302_v47  ;;  %v8305_v59 = vld [vmem:[%s7583_s5 + $0xdb] sm:$0xff] }
  0xf6   : > { %8978 = vst [vmem:[#allocation8_spill] sm:$0xff] %v8305_v59  ;;  %v8321_v44 = vpack.c.bf16 %v8305_v59, %v8302_v47  ;;  %v8338_v59 = vld [vmem:[%s7583_s5 + $0xf3] sm:$0xff]  ;;  %v5890_v47 = vld [vmem:[%s7583_s5 + $0x89] sm:$0xff] }
  0xfb   : > { %6489 = vmatmul.mubr.msk.bf16.gmra.mrb[16].mxu1 %vm351_vm1, %v8251_v46 }
  0xfc   : > { %6761 = vmatmul.mubr.msk.bf16.gmra.mrb[16].mxu0 %vm351_vm1, %v3543_v3  ;;  %6492 = vmatprep.mubr.msk.bf16.mxu1 %vm351_vm1, %v8257_v40  ;;  %v5861_v3 = vld [vmem:[%s7583_s5 + $0x121] sm:$0xff] }
  0xfd   : > { %6764 = vmatprep.mubr.msk.bf16.mxu0 %vm351_vm1, %v3544_v2  ;;  %v8312_v2 = vld [vmem:[%s7583_s5 + $0xe3] sm:$0xff]  ;;  %v8323_v31 = vpack.c.bf16 %v5861_v3, %v5860_v42  ;;  %v8341_v42 = vld [vmem:[%s7583_s5 + $0xfb] sm:$0xff] }
  0xfe   : > { %8979 = vst [vmem:[#allocation9_spill] sm:$0xff] %v8312_v2  ;;  %v8327_v26 = vpack.c.bf16 %v8315_v10, %v8312_v2  ;;  %8981 = vst [vmem:[#allocation11_spill] sm:$0xff] %v8341_v42  ;;  %v5864_v3 = vld [vmem:[%s7583_s5 + $0x139] sm:$0xff] }
  0xff   : > { %v5888_v2 = vld [vmem:[%s7583_s5 + $0x79] sm:$0xff] }
 0x100   : > { %v3837_v62 = vpack.c.bf16 %v7667_v56, %v5888_v2  ;;  %v8373_v56 = vld [vmem:[%s8959_s1 + $0x70] sm:$0x3f]  }
 0x103   : > { %6493 = vmatmul.mubr.msk.bf16.gmra.mrb[20].mxu1 %vm351_vm1, %v8286_v52 }
 0x104   : > { %6765 = vmatmul.mubr.msk.bf16.gmra.mrb[20].mxu0 %vm351_vm1, %v3545_v53  ;;  %6496 = vmatprep.mubr.msk.bf16.mxu1 %vm351_vm1, %v8292_v7  ;;  %v5863_v53 = vld [vmem:[%s7583_s5 + $0x131] sm:$0xff] }
 0x105   : > { %6768 = vmatprep.mubr.msk.bf16.mxu0 %vm351_vm1, %v8294_v36  ;;  %v8329_v54 = vpack.c.bf16 %v5863_v53, %v5862_v23  ;;  %v5865_v23 = vld [vmem:[%s7583_s5 + $0x141] sm:$0xff]  ;;  %v1133_v53 = vpack.c.bf16 %v8341_v42, %v8338_v59  ;;  %v1795_v42 = vsel %vm400_vm0, %v8148_v15, 0 }
 0x106   : > { %v3549_v10 = vpack.c.bf16 %v5865_v23, %v5864_v3  ;;  %v4211_v3 = vsel %vm400_vm0, %v8154_v33, 0  ;;  %v3838_v23 = vpack.c.bf16 %v7682_v0, %v5890_v47  ;;  %v5892_v0 = vld [vmem:[%s7583_s5 + $0x99] sm:$0xff] }
 0x107   : > { %v3839_v15 = vpack.c.bf16 %v7691_v4, %v5892_v0  ;;  %v5900_v4 = vld [vmem:[%s7583_s5 + $0xd9] sm:$0xff] }
 0x10b   : > { %6497 = vmatmul.mubr.msk.bf16.gmra.mrb[24].mxu1 %vm351_vm1, %v8321_v44 }
 0x10c   : > { %6769 = vmatmul.mubr.msk.bf16.gmra.mrb[24].mxu0 %vm351_vm1, %v8323_v31  ;;  %6500 = vmatprep.mubr.msk.bf16.mxu1 %vm351_vm1, %v8327_v26 }
 0x10d   : > { %6772 = vmatprep.mubr.msk.bf16.mxu0 %vm351_vm1, %v8329_v54 }
 0x113   : > { %6501 = vmatmul.mubr.msk.bf16.gmra.mrb[28].mxu1 %vm351_vm1, %v1133_v53 }
 0x114   : > { %6773 = vmatmul.mubr.msk.bf16.gmra.mrb[28].mxu0 %vm351_vm1, %v3549_v10  ;;  %6506 = vmatprep.mubr.msk.bf16.mxu1 %vm351_vm1, %v8141_v63  ;;  %v8366_v63 = vld [vmem:[%s8959_s1 + $0x30] sm:$0x3f]  }
 0x115   : > { %6778 = vmatprep.mubr.msk.bf16.mxu0 %vm351_vm1, %v7811_v29  ;;  %v5894_v29 = vld [vmem:[%s7583_s5 + $0xa9] sm:$0xff] }
 0x116   : > { %v3840_v33 = vpack.c.bf16 %v7706_v12, %v5894_v29  ;;  %v5902_v12 = vld [vmem:[%s7583_s5 + $0xe9] sm:$0xff] }
 0x11b   : > { %6507 = vmatmul.mubr.msk.bf16.vlgmr.msra.gmra.mrb[0].mxu1 %vm351_vm1, %v8170_v41  ;;  %v5896_v41 = vld [vmem:[%s7583_s5 + $0xb9] sm:$0xff] }
 0x11c   : > { %6539 = vmatpush3.bf16.msra.mxu1 %v1795_v42  ;;  %6779 = vmatmul.mubr.msk.bf16.vlgmr.msra.gmra.mrb[0].mxu0 %vm351_vm1, %v3837_v62  ;;  %v3841_v62 = vpack.c.bf16 %v7715_v17, %v5896_v41  ;;  %v5904_v17 = vld [vmem:[%s7583_s5 + $0xf9] sm:$0xff] }
 0x11d   : > { %6811 = vmatpush3.bf16.msra.mxu0 %v4211_v3  ;;  %6510 = vmatprep.mubr.msk.bf16.mxu1 %vm351_vm1, %v8176_v20  ;;  %v5898_v20 = vld [vmem:[%s7583_s5 + $0xc9] sm:$0xff]  ;;  %v5524_v42 = vld [vmem:[%s7583_s5 + $0x34] sm:$0xff] }
 0x11e   : > { %6782 = vmatprep.mubr.msk.bf16.mxu0 %vm351_vm1, %v3838_v23  ;;  %7398 = vmatprep.subr.msk.bf16.mxu1 %vm400_vm0, %v8366_v63  ;;  %v3842_v47 = vpack.c.bf16 %v7730_v25, %v5898_v20  ;;  %v3845_v25 = vpack.c.bf16 %v8274_v38, %v5904_v17  ;;  %v5916_v38 = vld [vmem:[%s7583_s5 + $0x159] sm:$0xff]  ;;  %v5526_v3 = vld [vmem:[%s7583_s5 + $0x44] sm:$0xff]  ;;  %v5527_v23 = vld [vmem:[%s7583_s5 + $0x4c] sm:$0xff]  ;;  %v4141_v20 = vpack.c.bf16 %v8051_v43, %v8047_v37 }
 0x11f   : > { %7406 = vmatprep.subr.msk.bf16.mxu0 %vm400_vm0, %v8373_v56  ;;  %v1724_v29 = vpack.c.bf16 %v5527_v23, %v5526_v3  ;;  %v8477_v41 = vld [vmem:[%s8959_s1 + $0x38] sm:$0x3f]   ;;  %v8514_v37 = vld [vmem:[%s7583_s5 + $0x84] sm:$0xff]  ;;  %v8517_v43 = vld [vmem:[%s7583_s5 + $0x8c] sm:$0xff] }
 0x120   : > { %v8531_v17 = vld [vmem:[%s7583_s5 + $0x94] sm:$0xff]  ;;  %v5962_v3 = vld [vmem:[%s7583_s5 + $0x12a] sm:$0xff] }
 0x121   : > { %v5963_v23 = vld [vmem:[%s7583_s5 + $0x132] sm:$0xff] }
 0x123   : > { %6511 = vmatmul.mubr.msk.bf16.gmra.mrb[4].mxu1 %vm351_vm1, %v8192_v57  ;;  %v3843_v57 = vpack.c.bf16 %v7739_v30, %v5900_v4  ;;  %v8431_v30 = vld [vmem:[%s7583_s5 + $0x103] sm:$0xff]  ;;  %v8507_v4 = vld [vmem:[%s7583_s5 + $0x74] sm:$0xff] }
 0x124   : > { %6783 = vmatmul.mubr.msk.bf16.gmra.mrb[4].mxu0 %vm351_vm1, %v3839_v15  ;;  %6514 = vmatprep.mubr.msk.bf16.mxu1 %vm351_vm1, %v8197_v35  ;;  %v3844_v35 = vpack.c.bf16 %v7754_v39, %v5902_v12  ;;  %v8434_v39 = vld [vmem:[%s7583_s5 + $0x10b] sm:$0xff]  ;;  %v4513_v15 = vsel %vm400_vm0, %v8373_v56, 0  ;;  %v8510_v12 = vld [vmem:[%s7583_s5 + $0x7c] sm:$0xff] }
 0x125   : > { %6786 = vmatprep.mubr.msk.bf16.mxu0 %vm351_vm1, %v3840_v33  ;;  %v4140_v33 = vpack.c.bf16 %v8044_v28, %v8030_v22  ;;  %v5530_v22 = vld [vmem:[%s7583_s5 + $0x64] sm:$0xff]  ;;  %v8491_v28 = vld [vmem:[%s7583_s5 + $0x6c] sm:$0xff] }
 0x12b   : > { %6515 = vmatmul.mubr.msk.bf16.gmra.mrb[8].mxu1 %vm351_vm1, %v8221_v13  ;;  %v5914_v13 = vld [vmem:[%s7583_s5 + $0x149] sm:$0xff] }
 0x12c   : > { %6787 = vmatmul.mubr.msk.bf16.gmra.mrb[8].mxu0 %vm351_vm1, %v3841_v62  ;;  %6518 = vmatprep.mubr.msk.bf16.mxu1 %vm351_vm1, %v8227_v48  ;;  %v5915_v48 = vld [vmem:[%s7583_s5 + $0x151] sm:$0xff]  ;;  %v1726_v62 = vpack.c.bf16 %v8491_v28, %v5530_v22  ;;  %v8612_v22 = vld [vmem:[%s7583_s5 + $0x104] sm:$0xff] }
 0x12d   : > { %6790 = vmatprep.mubr.msk.bf16.mxu0 %vm351_vm1, %v3842_v47  ;;  %v4142_v47 = vpack.c.bf16 %v8068_v49, %v8054_v50  ;;  %v1727_v50 = vpack.c.bf16 %v8510_v12, %v8507_v4  ;;  %v4143_v49 = vpack.c.bf16 %v8076_v11, %v8071_v19  ;;  %v8538_v19 = vld [vmem:[%s7583_s5 + $0xa4] sm:$0xff]  ;;  %v8541_v11 = vld [vmem:[%s7583_s5 + $0xac] sm:$0xff] }
 0x133   : > { %6519 = vmatmul.mubr.msk.bf16.gmra.mrb[12].mxu1 %vm351_vm1, %v8251_v46  ;;  %v1434_v46 = vpack.c.bf16 %v8434_v39, %v8431_v30 }
 0x134   : > { %6791 = vmatmul.mubr.msk.bf16.gmra.mrb[12].mxu0 %vm351_vm1, %v3843_v57  ;;  %6522 = vmatprep.mubr.msk.bf16.mxu1 %vm351_vm1, %v8257_v40  ;;  %v3850_v40 = vpack.c.bf16 %v5915_v48, %v5914_v13  ;;  %v1728_v57 = vpack.c.bf16 %v8517_v43, %v8514_v37  ;;  %v1730_v13 = vpack.c.bf16 %v8541_v11, %v8538_v19 }
 0x135   : > { %6794 = vmatprep.mubr.msk.bf16.mxu0 %vm351_vm1, %v3844_v35  ;;  %v4144_v35 = vpack.c.bf16 %v8092_v58, %v8079_v27  ;;  %v4145_v58 = vpack.c.bf16 %v8101_v6, %v8095_v61  ;;  %v4146_v48 = vpack.c.bf16 %v8116_v32, %v8104_v9  ;;  %v5957_v61 = vld [vmem:[%s7583_s5 + $0x102] sm:$0xff]  ;;  %v8566_v9 = vld [vmem:[%s7583_s5 + $0xcc] sm:$0xff] }
 0x136   : > { %v8563_v6 = vld [vmem:[%s7583_s5 + $0xc4] sm:$0xff] }
 0x137   : > { %v5958_v32 = vld [vmem:[%s7583_s5 + $0x10a] sm:$0xff] }
 0x13b   : > { %6523 = vmatmul.mubr.msk.bf16.gmra.mrb[16].mxu1 %vm351_vm1, %v8286_v52  ;;  %v5523_v52 = vld [vmem:[%s7583_s5 + $0x2c] sm:$0xff] }
 0x13c   : > { %6795 = vmatmul.mubr.msk.bf16.gmra.mrb[16].mxu0 %vm351_vm1, %v3845_v25  ;;  %6526 = vmatprep.mubr.msk.bf16.mxu1 %vm351_vm1, %v8292_v7  ;;  %v8534_v25 = vld [vmem:[%s7583_s5 + $0x9c] sm:$0xff] }
 0x13d   : > { %6798 = vmatprep.mubr.msk.bf16.mxu0 %vm351_vm1, %v8294_v36  ;;  %v1729_v27 = vpack.c.bf16 %v8534_v25, %v8531_v17 }
 0x143   : > { %6527 = vmatmul.mubr.msk.bf16.gmra.mrb[20].mxu1 %vm351_vm1, %v8321_v44  ;;  %v5522_v44 = vld [vmem:[%s7583_s5 + $0x24] sm:$0xff] }
 0x144   : > { %6799 = vmatmul.mubr.msk.bf16.gmra.mrb[20].mxu0 %vm351_vm1, %v8323_v31  ;;  %6530 = vmatprep.mubr.msk.bf16.mxu1 %vm351_vm1, %v8327_v26  ;;  %v8447_v26 = vld [vmem:[%s7583_s5 + $0x11b] sm:$0xff]  ;;  %v1722_v2 = vpack.c.bf16 %v5523_v52, %v5522_v44  ;;  %v4147_v44 = vpack.c.bf16 %v5957_v61, %v8119_v34  ;;  %v1732_v52 = vpack.c.bf16 %v8566_v9, %v8563_v6  ;;  %v5575_v61 = vld [vmem:[%s7583_s5 + $0x2d] sm:$0xff] }
 0x145   : > { %6802 = vmatprep.mubr.msk.bf16.mxu0 %vm351_vm1, %v8329_v54  ;;  %v8444_v54 = vld [vmem:[%s7583_s5 + $0x113] sm:$0xff]  ;;  %v5917_v31 = vld [vmem:[%s7583_s5 + $0x161] sm:$0xff] }
 0x146   : > { %v1435_v7 = vpack.c.bf16 %v8447_v26, %v8444_v54  ;;  %v3851_v36 = vpack.c.bf16 %v5917_v31, %v5916_v38  ;;  %v5959_v38 = vld [vmem:[%s7583_s5 + $0x112] sm:$0xff]  ;;  %v5961_v34 = vld [vmem:[%s7583_s5 + $0x122] sm:$0xff] }
 0x14b   : > { %6531 = vmatmul.mubr.msk.bf16.gmra.mrb[24].mxu1 %vm351_vm1, %v1133_v53  ;;  %v5525_v53 = vld [vmem:[%s7583_s5 + $0x3c] sm:$0xff] }
 0x14c   : > { %6803 = vmatmul.mubr.msk.bf16.gmra.mrb[24].mxu0 %vm351_vm1, %v3549_v10  ;;  %6534 = vmatprep.mubr.msk.bf16.mxu1 %vm351_vm1, %v1434_v46  ;;  %v4138_v10 = vpack.c.bf16 %v8020_v21, %v8009_v60  ;;  %v1723_v0 = vpack.c.bf16 %v5525_v53, %v5524_v42  ;;  %v4139_v60 = vpack.c.bf16 %v8027_v16, %v8023_v24  ;;  %v2097_v21 = vsel %vm400_vm0, %v8366_v63, 0  ;;  %v8483_v24 = vld [vmem:[%s8959_s1 + $0x78] sm:$0x3f]   ;;  %v8588_v42 = vld [vmem:[%s7583_s5 + $0xe4] sm:$0xff]  ;;  %v8591_v53 = vld [vmem:[%s7583_s5 + $0xec] sm:$0xff] }
 0x14d   : > { %6806 = vmatprep.mubr.msk.bf16.mxu0 %vm351_vm1, %v3850_v40  ;;  %v5528_v16 = vld [vmem:[%s7583_s5 + $0x54] sm:$0xff]  ;;  %v5529_v63 = vld [vmem:[%s7583_s5 + $0x5c] sm:$0xff] }
 0x14e   : > { %v1725_v56 = vpack.c.bf16 %v5529_v63, %v5528_v16  ;;  %v8555_v46 = vld [vmem:[%s7583_s5 + $0xb4] sm:$0xff]  ;;  %v8558_v40 = vld [vmem:[%s7583_s5 + $0xbc] sm:$0xff] }
 0x14f   : > { %v1731_v31 = vpack.c.bf16 %v8558_v40, %v8555_v46  ;;  %v5964_v16 = vld [vmem:[%s7583_s5 + $0x13a] sm:$0xff]  ;;  %v5965_v63 = vld [vmem:[%s7583_s5 + $0x142] sm:$0xff] }
 0x153   : > { %6535 = vmatmul.mubr.msk.bf16.gmra.mrb[28].mxu1 %vm351_vm1, %v1435_v7  ;;  %v4148_v7 = vpack.c.bf16 %v5959_v38, %v5958_v32 }
 0x154   : > { %6807 = vmatmul.mubr.msk.bf16.gmra.mrb[28].mxu0 %vm351_vm1, %v3851_v36  ;;  %6540 = vmatprep.mubr.msk.bf16.mxu1 %vm351_vm1, %v1722_v2  ;;  %v8579_v36 = vld [vmem:[%s7583_s5 + $0xd4] sm:$0xff]  ;;  %v8582_v2 = vld [vmem:[%s7583_s5 + $0xdc] sm:$0xff] }
 0x155   : > { %6812 = vmatprep.mubr.msk.bf16.mxu0 %vm351_vm1, %v4138_v10  ;;  %v5960_v10 = vld [vmem:[%s7583_s5 + $0x11a] sm:$0xff] }
 0x15b   : > { %6541 = vmatmul.mubr.msk.bf16.vlgmr.msra.gmra.mrb[0].mxu1 %vm351_vm1, %v1723_v0  ;;  %v1733_v0 = vpack.c.bf16 %v8582_v2, %v8579_v36 }
 0x15c   : > { %6573 = vmatpush3.bf16.msra.mxu1 %v2097_v21  ;;  %6813 = vmatmul.mubr.msk.bf16.vlgmr.msra.gmra.mrb[0].mxu0 %vm351_vm1, %v4139_v60  ;;  %v4149_v60 = vpack.c.bf16 %v5961_v34, %v5960_v10  ;;  %v1734_v21 = vpack.c.bf16 %v8591_v53, %v8588_v42  ;;  %v5578_v10 = vld [vmem:[%s7583_s5 + $0x45] sm:$0xff]  ;;  %v5579_v34 = vld [vmem:[%s7583_s5 + $0x4d] sm:$0xff] }
 0x15d   : > { %6845 = vmatpush3.bf16.msra.mxu0 %v4513_v15  ;;  %6544 = vmatprep.mubr.msk.bf16.mxu1 %vm351_vm1, %v1724_v29  ;;  %v4150_v29 = vpack.c.bf16 %v5963_v23, %v5962_v3  ;;  %v8603_v15 = vld [vmem:[%s7583_s5 + $0xf4] sm:$0xff]  ;;  %v2026_v23 = vpack.c.bf16 %v5579_v34, %v5578_v10 }
 0x15e   : > { %6816 = vmatprep.mubr.msk.bf16.mxu0 %vm351_vm1, %v4140_v33  ;;  %7399 = vmatprep.subr.msk.bf16.mxu1 %vm400_vm0, %v8477_v41  ;;  %v8606_v33 = vld [vmem:[%s7583_s5 + $0xfc] sm:$0xff] }
 0x15f   : > { %7407 = vmatprep.subr.msk.bf16.mxu0 %vm400_vm0, %v8483_v24  ;;  %v8989_v10 = vld [vmem:[#allocation9_spill] sm:$0xff] }
 0x163   : > { %6545 = vmatmul.mubr.msk.bf16.gmra.mrb[4].mxu1 %vm351_vm1, %v1725_v56  ;;  %v8615_v56 = vld [vmem:[%s7583_s5 + $0x10c] sm:$0xff] }
 0x164   : > { %6817 = vmatmul.mubr.msk.bf16.gmra.mrb[4].mxu0 %vm351_vm1, %v4141_v20  ;;  %6548 = vmatprep.mubr.msk.bf16.mxu1 %vm351_vm1, %v1726_v62  ;;  %v5966_v20 = vld [vmem:[%s7583_s5 + $0x14a] sm:$0xff]  ;;  %v5967_v62 = vld [vmem:[%s7583_s5 + $0x152] sm:$0xff] }
 0x165   : > { %6820 = vmatprep.mubr.msk.bf16.mxu0 %vm351_vm1, %v4142_v47  ;;  %v1735_v47 = vpack.c.bf16 %v8606_v33, %v8603_v15 }
 0x16b   : > { %6549 = vmatmul.mubr.msk.bf16.gmra.mrb[8].mxu1 %vm351_vm1, %v1727_v50  ;;  %v4151_v50 = vpack.c.bf16 %v5965_v63, %v5964_v16  ;;  %v8983_v16 = vld [vmem:[#allocation3_spill] sm:$0xff] }
 0x16c   : > { %6821 = vmatmul.mubr.msk.bf16.gmra.mrb[8].mxu0 %vm351_vm1, %v4143_v49  ;;  %6552 = vmatprep.mubr.msk.bf16.mxu1 %vm351_vm1, %v1728_v57  ;;  %v1736_v49 = vpack.c.bf16 %v8615_v56, %v8612_v22  ;;  %v4152_v57 = vpack.c.bf16 %v5967_v62, %v5966_v20  ;;  %v5584_v20 = vld [vmem:[%s7583_s5 + $0x75] sm:$0xff]  ;;  %v5585_v62 = vld [vmem:[%s7583_s5 + $0x7d] sm:$0xff] }
 0x16d   : > { %6824 = vmatprep.mubr.msk.bf16.mxu0 %vm351_vm1, %v4144_v35  ;;  %v8627_v35 = vld [vmem:[%s7583_s5 + $0x114] sm:$0xff] }
 0x173   : > { %6553 = vmatmul.mubr.msk.bf16.gmra.mrb[12].mxu1 %vm351_vm1, %v1729_v27  ;;  %v8630_v27 = vld [vmem:[%s7583_s5 + $0x11c] sm:$0xff] }
 0x174   : > { %6825 = vmatmul.mubr.msk.bf16.gmra.mrb[12].mxu0 %vm351_vm1, %v4145_v58  ;;  %6556 = vmatprep.mubr.msk.bf16.mxu1 %vm351_vm1, %v1730_v13  ;;  %v5968_v58 = vld [vmem:[%s7583_s5 + $0x15a] sm:$0xff]  ;;  %v5969_v13 = vld [vmem:[%s7583_s5 + $0x162] sm:$0xff]  ;;  %v1737_v32 = vpack.c.bf16 %v8630_v27, %v8627_v35 }
 0x175   : > { %6828 = vmatprep.mubr.msk.bf16.mxu0 %vm351_vm1, %v4146_v48  ;;  %v5574_v48 = vld [vmem:[%s7583_s5 + $0x25] sm:$0xff]  ;;  %v4153_v38 = vpack.c.bf16 %v5969_v13, %v5968_v58 }
 0x176   : > { %v8986_v13 = vld [vmem:[#allocation6_spill] sm:$0xff] }
 0x17b   : > { %6557 = vmatmul.mubr.msk.bf16.gmra.mrb[16].mxu1 %vm351_vm1, %v1731_v31  ;;  %v2024_v31 = vpack.c.bf16 %v5575_v61, %v5574_v48  ;;  %v8987_v48 = vld [vmem:[#allocation7_spill] sm:$0xff] }
 0x17c   : > { %6829 = vmatmul.mubr.msk.bf16.gmra.mrb[16].mxu0 %vm351_vm1, %v4147_v44  ;;  %6560 = vmatprep.mubr.msk.bf16.mxu1 %vm351_vm1, %v1732_v52  ;;  %v4440_v44 = vpack.c.bf16 %v8207_v8, %v8190_v51  ;;  %v5576_v52 = vld [vmem:[%s7583_s5 + $0x35] sm:$0xff]  ;;  %v4441_v51 = vpack.c.bf16 %v8214_v45, %v8210_v1  ;;  %v2399_v8 = vsel %vm400_vm0, %v8477_v41, 0  ;;  %v5582_v1 = vld [vmem:[%s7583_s5 + $0x65] sm:$0xff]  ;;  %v5583_v45 = vld [vmem:[%s7583_s5 + $0x6d] sm:$0xff]  ;;  %v4446_v61 = vpack.c.bf16 %v8987_v48, %v8986_v13 }
 0x17d   : > { %6832 = vmatprep.mubr.msk.bf16.mxu0 %vm351_vm1, %v4148_v7  ;;  %v5577_v7 = vld [vmem:[%s7583_s5 + $0x3d] sm:$0xff]  ;;  %v6019_v13 = vld [vmem:[%s7583_s5 + $0x153] sm:$0xff] }
 0x17e   : > { %v2025_v3 = vpack.c.bf16 %v5577_v7, %v5576_v52  ;;  %v8988_v7 = vld [vmem:[#allocation8_spill] sm:$0xff] }
 0x17f   : > { %v4447_v34 = vpack.c.bf16 %v8989_v10, %v8988_v7  ;;  %v6021_v7 = vld [vmem:[%s7583_s5 + $0x163] sm:$0xff] }
 0x180   : > { %v5626_v10 = vld [vmem:[%s7583_s5 + $0x26] sm:$0xff] }
 0x183   : > { %6561 = vmatmul.mubr.msk.bf16.gmra.mrb[20].mxu1 %vm351_vm1, %v1733_v0  ;;  %v4815_v0 = vsel %vm400_vm0, %v8483_v24, 0  ;;  %v8982_v24 = vld [vmem:[#allocation2_spill] sm:$0xff] }
 0x184   : > { %6833 = vmatmul.mubr.msk.bf16.gmra.mrb[20].mxu0 %vm351_vm1, %v4149_v60  ;;  %6564 = vmatprep.mubr.msk.bf16.mxu1 %vm351_vm1, %v1734_v21  ;;  %v4442_v60 = vpack.c.bf16 %v8237_v55, %v8217_v5  ;;  %v5580_v21 = vld [vmem:[%s7583_s5 + $0x55] sm:$0xff]  ;;  %v4443_v5 = vpack.c.bf16 %v8244_v18, %v8240_v14  ;;  %v2028_v55 = vpack.c.bf16 %v5583_v45, %v5582_v1  ;;  %v5587_v14 = vld [vmem:[%s7583_s5 + $0x8d] sm:$0xff] }
 0x185   : > { %6836 = vmatprep.mubr.msk.bf16.mxu0 %vm351_vm1, %v4150_v29  ;;  %v5581_v29 = vld [vmem:[%s7583_s5 + $0x5d] sm:$0xff]  ;;  %v4444_v63 = vpack.c.bf16 %v8983_v16, %v8982_v24  ;;  %v2029_v18 = vpack.c.bf16 %v5585_v62, %v5584_v20  ;;  %v5599_v16 = vld [vmem:[%s7583_s5 + $0xed] sm:$0xff] }
 0x186   : > { %v2027_v41 = vpack.c.bf16 %v5581_v29, %v5580_v21  ;;  %v5595_v21 = vld [vmem:[%s7583_s5 + $0xcd] sm:$0xff]  ;;  %v6013_v24 = vld [vmem:[%s7583_s5 + $0x123] sm:$0xff] }
 0x187   : > { %v8991_v29 = vld [vmem:[#allocation11_spill] sm:$0xff]  ;;  %v4451_v20 = vpack.c.bf16 %v6013_v24, %v8447_v26  ;;  %v5636_v24 = vld [vmem:[%s7583_s5 + $0x76] sm:$0xff] }
 0x188   : > { %v4449_v1 = vpack.c.bf16 %v8431_v30, %v8991_v29  ;;  %v5598_v30 = vld [vmem:[%s7583_s5 + $0xe5] sm:$0xff]  ;;  %v5603_v26 = vld [vmem:[%s7583_s5 + $0x10d] sm:$0xff] }
 0x189   : > { %v2036_v62 = vpack.c.bf16 %v5599_v16, %v5598_v30  ;;  %v5637_v30 = vld [vmem:[%s7583_s5 + $0x7e] sm:$0xff]  ;;  %v5638_v16 = vld [vmem:[%s7583_s5 + $0x86] sm:$0xff] }
 0x18b   : > { %6565 = vmatmul.mubr.msk.bf16.gmra.mrb[24].mxu1 %vm351_vm1, %v1735_v47  ;;  %v5586_v47 = vld [vmem:[%s7583_s5 + $0x85] sm:$0xff] }
 0x18c   : > { %6837 = vmatmul.mubr.msk.bf16.gmra.mrb[24].mxu0 %vm351_vm1, %v4151_v50  ;;  %6568 = vmatprep.mubr.msk.bf16.mxu1 %vm351_vm1, %v1736_v49  ;;  %v8984_v50 = vld [vmem:[#allocation4_spill] sm:$0xff]  ;;  %v8985_v49 = vld [vmem:[#allocation5_spill] sm:$0xff]  ;;  %v2030_v58 = vpack.c.bf16 %v5587_v14, %v5586_v47 }
 0x18d   : > { %6840 = vmatprep.mubr.msk.bf16.mxu0 %vm351_vm1, %v4152_v57  ;;  %v4445_v57 = vpack.c.bf16 %v8985_v49, %v8984_v50  ;;  %v5600_v14 = vld [vmem:[%s7583_s5 + $0xf5] sm:$0xff]  ;;  %v6017_v49 = vld [vmem:[%s7583_s5 + $0x143] sm:$0xff] }
 0x18e   : > { %v6016_v50 = vld [vmem:[%s7583_s5 + $0x13b] sm:$0xff] }
 0x193   : > { %6569 = vmatmul.mubr.msk.bf16.gmra.mrb[28].mxu1 %vm351_vm1, %v1737_v32  ;;  %v5588_v32 = vld [vmem:[%s7583_s5 + $0x95] sm:$0xff] }
 0x194   : > { %6841 = vmatmul.mubr.msk.bf16.gmra.mrb[28].mxu0 %vm351_vm1, %v4153_v38  ;;  %6574 = vmatprep.mubr.msk.bf16.mxu1 %vm351_vm1, %v2024_v31  ;;  %v5589_v38 = vld [vmem:[%s7583_s5 + $0x9d] sm:$0xff]  ;;  %v5590_v31 = vld [vmem:[%s7583_s5 + $0xa5] sm:$0xff] }
 0x195   : > { %6846 = vmatprep.mubr.msk.bf16.mxu0 %vm351_vm1, %v4440_v44  ;;  %v5591_v44 = vld [vmem:[%s7583_s5 + $0xad] sm:$0xff]  ;;  %v2031_v52 = vpack.c.bf16 %v5589_v38, %v5588_v32 }
 0x19b   : > { %6575 = vmatmul.mubr.msk.bf16.vlgmr.msra.gmra.mrb[0].mxu1 %vm351_vm1, %v2025_v3  ;;  %v2032_v3 = vpack.c.bf16 %v5591_v44, %v5590_v31  ;;  %v5604_v31 = vld [vmem:[%s7583_s5 + $0x115] sm:$0xff]  ;;  %v5605_v44 = vld [vmem:[%s7583_s5 + $0x11d] sm:$0xff] }
 0x19c   : > { %6607 = vmatpush3.bf16.msra.mxu1 %v2399_v8  ;;  %6847 = vmatmul.mubr.msk.bf16.vlgmr.msra.gmra.mrb[0].mxu0 %vm351_vm1, %v4441_v51  ;;  %v8990_v51 = vld [vmem:[#allocation10_spill] sm:$0xff] }
 0x19d   : > { %6879 = vmatpush3.bf16.msra.mxu0 %v4815_v0  ;;  %6578 = vmatprep.mubr.msk.bf16.mxu1 %vm351_vm1, %v2026_v23  ;;  %v4448_v8 = vpack.c.bf16 %v8338_v59, %v8990_v51  ;;  %v5592_v23 = vld [vmem:[%s7583_s5 + $0xb5] sm:$0xff]  ;;  %v5593_v0 = vld [vmem:[%s7583_s5 + $0xbd] sm:$0xff] }
 0x19e   : > { %6850 = vmatprep.mubr.msk.bf16.mxu0 %vm351_vm1, %v4442_v60  ;;  %v5594_v60 = vld [vmem:[%s7583_s5 + $0xc5] sm:$0xff]  ;;  %v2033_v59 = vpack.c.bf16 %v5593_v0, %v5592_v23  ;;  %v4742_v23 = vpack.c.bf16 %v8507_v4, %v8491_v28  ;;  %v5628_v0 = vld [vmem:[%s7583_s5 + $0x36] sm:$0xff]  ;;  %v4743_v28 = vpack.c.bf16 %v8514_v37, %v8510_v12  ;;  %v5635_v12 = vld [vmem:[%s7583_s5 + $0x6e] sm:$0xff] }
 0x19f   : > { %v2034_v45 = vpack.c.bf16 %v5595_v21, %v5594_v60  ;;  %v5629_v60 = vld [vmem:[%s7583_s5 + $0x3e] sm:$0xff]  ;;  %v5630_v21 = vld [vmem:[%s7583_s5 + $0x46] sm:$0xff] }
 0x1a0   : > { %v2327_v29 = vpack.c.bf16 %v5629_v60, %v5628_v0  ;;  %v5657_v0 = vld [vmem:[%s7583_s5 + $0x11e] sm:$0xff] }
 0x1a1   : > { %v6072_v60 = vld [vmem:[%s7583_s5 + $0x15c] sm:$0xff] }
 0x1a3   : > { %6579 = vmatmul.mubr.msk.bf16.gmra.mrb[4].mxu1 %vm351_vm1, %v2027_v41  ;;  %v4450_v41 = vpack.c.bf16 %v8444_v54, %v8434_v39  ;;  %v6014_v39 = vld [vmem:[%s7583_s5 + $0x12b] sm:$0xff]  ;;  %v6015_v54 = vld [vmem:[%s7583_s5 + $0x133] sm:$0xff] }
 0x1a4   : > { %6851 = vmatmul.mubr.msk.bf16.gmra.mrb[4].mxu0 %vm351_vm1, %v4443_v5  ;;  %6582 = vmatprep.mubr.msk.bf16.mxu1 %vm351_vm1, %v2028_v55  ;;  %v5596_v5 = vld [vmem:[%s7583_s5 + $0xd5] sm:$0xff]  ;;  %v5597_v55 = vld [vmem:[%s7583_s5 + $0xdd] sm:$0xff]  ;;  %v4452_v47 = vpack.c.bf16 %v6015_v54, %v6014_v39  ;;  %v4748_v39 = vpack.c.bf16 %v8579_v36, %v8566_v9  ;;  %v4749_v9 = vpack.c.bf16 %v8588_v42, %v8582_v2  ;;  %v5646_v2 = vld [vmem:[%s7583_s5 + $0xc6] sm:$0xff] }
 0x1a5   : > { %6854 = vmatprep.mubr.msk.bf16.mxu0 %vm351_vm1, %v4444_v63  ;;  %v2035_v63 = vpack.c.bf16 %v5597_v55, %v5596_v5  ;;  %v5634_v5 = vld [vmem:[%s7583_s5 + $0x66] sm:$0xff]  ;;  %v4746_v55 = vpack.c.bf16 %v8555_v46, %v8541_v11  ;;  %v4747_v11 = vpack.c.bf16 %v8563_v6, %v8558_v40  ;;  %v5640_v54 = vld [vmem:[%s7583_s5 + $0x96] sm:$0xff]  ;;  %v5643_v40 = vld [vmem:[%s7583_s5 + $0xae] sm:$0xff] }
 0x1a6   : > { %v5647_v42 = vld [vmem:[%s7583_s5 + $0xce] sm:$0xff] }
 0x1ab   : > { %6583 = vmatmul.mubr.msk.bf16.gmra.mrb[8].mxu1 %vm351_vm1, %v2029_v18  ;;  %v5601_v18 = vld [vmem:[%s7583_s5 + $0xfd] sm:$0xff] }
 0x1ac   : > { %6855 = vmatmul.mubr.msk.bf16.gmra.mrb[8].mxu0 %vm351_vm1, %v4445_v57  ;;  %6586 = vmatprep.mubr.msk.bf16.mxu1 %vm351_vm1, %v2030_v58  ;;  %v5602_v57 = vld [vmem:[%s7583_s5 + $0x105] sm:$0xff]  ;;  %v2037_v48 = vpack.c.bf16 %v5601_v18, %v5600_v14  ;;  %v2336_v18 = vpack.c.bf16 %v5647_v42, %v5646_v2 }
 0x1ad   : > { %6858 = vmatprep.mubr.msk.bf16.mxu0 %vm351_vm1, %v4446_v61  ;;  %v6018_v58 = vld [vmem:[%s7583_s5 + $0x14b] sm:$0xff]  ;;  %v4453_v61 = vpack.c.bf16 %v6017_v49, %v6016_v50  ;;  %v2038_v32 = vpack.c.bf16 %v5603_v26, %v5602_v57  ;;  %v5645_v14 = vld [vmem:[%s7583_s5 + $0xbe] sm:$0xff]  ;;  %v4752_v50 = vpack.c.bf16 %v8627_v35, %v8615_v56  ;;  %v5648_v49 = vld [vmem:[%s7583_s5 + $0xd6] sm:$0xff] }
 0x1ae   : > { %v4454_v38 = vpack.c.bf16 %v6019_v13, %v6018_v58  ;;  %v5649_v57 = vld [vmem:[%s7583_s5 + $0xde] sm:$0xff]  ;;  %v6066_v56 = vld [vmem:[%s7583_s5 + $0x12c] sm:$0xff]  ;;  %v6067_v35 = vld [vmem:[%s7583_s5 + $0x134] sm:$0xff] }
 0x1af   : > { %v6065_v26 = vld [vmem:[%s7583_s5 + $0x124] sm:$0xff]  ;;  %v2337_v58 = vpack.c.bf16 %v5649_v57, %v5648_v49 }
 0x1b0   : > { %v4753_v13 = vpack.c.bf16 %v6065_v26, %v8630_v27  ;;  %v5655_v27 = vld [vmem:[%s7583_s5 + $0x10e] sm:$0xff] }
 0x1b3   : > { %6587 = vmatmul.mubr.msk.bf16.gmra.mrb[12].mxu1 %vm351_vm1, %v2031_v52  ;;  %v6020_v52 = vld [vmem:[%s7583_s5 + $0x15b] sm:$0xff] }
 0x1b4   : > { %6859 = vmatmul.mubr.msk.bf16.gmra.mrb[12].mxu0 %vm351_vm1, %v4447_v34  ;;  %6590 = vmatprep.mubr.msk.bf16.mxu1 %vm351_vm1, %v2032_v3  ;;  %v5627_v34 = vld [vmem:[%s7583_s5 + $0x2e] sm:$0xff]  ;;  %v2039_v3 = vpack.c.bf16 %v5605_v44, %v5604_v31  ;;  %v4455_v51 = vpack.c.bf16 %v6021_v7, %v6020_v52  ;;  %v6068_v31 = vld [vmem:[%s7583_s5 + $0x13c] sm:$0xff]  ;;  %v6069_v44 = vld [vmem:[%s7583_s5 + $0x144] sm:$0xff] }
 0x1b5   : > { %6862 = vmatprep.mubr.msk.bf16.mxu0 %vm351_vm1, %v4448_v8  ;;  %v2326_v8 = vpack.c.bf16 %v5627_v34, %v5626_v10  ;;  %v5654_v52 = vld [vmem:[%s7583_s5 + $0x106] sm:$0xff]  ;;  %v6071_v10 = vld [vmem:[%s7583_s5 + $0x154] sm:$0xff] }
 0x1b6   : > { %v6070_v7 = vld [vmem:[%s7583_s5 + $0x14c] sm:$0xff] }
 0x1bb   : > { %6591 = vmatmul.mubr.msk.bf16.gmra.mrb[16].mxu1 %vm351_vm1, %v2033_v59  ;;  %v5631_v59 = vld [vmem:[%s7583_s5 + $0x4e] sm:$0xff] }
 0x1bc   : > { %6863 = vmatmul.mubr.msk.bf16.gmra.mrb[16].mxu0 %vm351_vm1, %v4449_v1  ;;  %6594 = vmatprep.mubr.msk.bf16.mxu1 %vm351_vm1, %v2034_v45  ;;  %v2328_v4 = vpack.c.bf16 %v5631_v59, %v5630_v21  ;;  %v4744_v1 = vpack.c.bf16 %v8531_v17, %v8517_v43  ;;  %v5632_v45 = vld [vmem:[%s7583_s5 + $0x56] sm:$0xff]  ;;  %v4745_v43 = vpack.c.bf16 %v8538_v19, %v8534_v25  ;;  %v5639_v25 = vld [vmem:[%s7583_s5 + $0x8e] sm:$0xff]  ;;  %v6073_v21 = vld [vmem:[%s7583_s5 + $0x164] sm:$0xff] }
 0x1bd   : > { %6866 = vmatprep.mubr.msk.bf16.mxu0 %vm351_vm1, %v4450_v41  ;;  %v5633_v41 = vld [vmem:[%s7583_s5 + $0x5e] sm:$0xff]  ;;  %v2330_v17 = vpack.c.bf16 %v5635_v12, %v5634_v5  ;;  %v2331_v19 = vpack.c.bf16 %v5637_v30, %v5636_v24  ;;  %v2332_v46 = vpack.c.bf16 %v5639_v25, %v5638_v16 }
 0x1be   : > { %v2329_v37 = vpack.c.bf16 %v5633_v41, %v5632_v45 }
 0x1c3   : > { %6595 = vmatmul.mubr.msk.bf16.gmra.mrb[20].mxu1 %vm351_vm1, %v2035_v63  ;;  %v5641_v63 = vld [vmem:[%s7583_s5 + $0x9e] sm:$0xff] }
 0x1c4   : > { %6867 = vmatmul.mubr.msk.bf16.gmra.mrb[20].mxu0 %vm351_vm1, %v4451_v20  ;;  %6598 = vmatprep.mubr.msk.bf16.mxu1 %vm351_vm1, %v2036_v62  ;;  %v5642_v20 = vld [vmem:[%s7583_s5 + $0xa6] sm:$0xff]  ;;  %v2333_v6 = vpack.c.bf16 %v5641_v63, %v5640_v54  ;;  %v4750_v62 = vpack.c.bf16 %v8603_v15, %v8591_v53  ;;  %v4751_v15 = vpack.c.bf16 %v8612_v22, %v8606_v33  ;;  %v5651_v22 = vld [vmem:[%s7583_s5 + $0xee] sm:$0xff] }
 0x1c5   : > { %6870 = vmatprep.mubr.msk.bf16.mxu0 %vm351_vm1, %v4452_v47  ;;  %v2334_v36 = vpack.c.bf16 %v5643_v40, %v5642_v20  ;;  %v5644_v47 = vld [vmem:[%s7583_s5 + $0xb6] sm:$0xff]  ;;  %v5650_v33 = vld [vmem:[%s7583_s5 + $0xe6] sm:$0xff] }
 0x1c6   : > { %v2335_v53 = vpack.c.bf16 %v5645_v14, %v5644_v47 }
 0x1cb   : > { %6599 = vmatmul.mubr.msk.bf16.gmra.mrb[24].mxu1 %vm351_vm1, %v2037_v48  ;;  %v2338_v48 = vpack.c.bf16 %v5651_v22, %v5650_v33 }
 0x1cc   : > { %6871 = vmatmul.mubr.msk.bf16.gmra.mrb[24].mxu0 %vm351_vm1, %v4453_v61  ;;  %6602 = vmatprep.mubr.msk.bf16.mxu1 %vm351_vm1, %v2038_v32  ;;  %v4754_v61 = vpack.c.bf16 %v6067_v35, %v6066_v56  ;;  %v5652_v32 = vld [vmem:[%s7583_s5 + $0xf6] sm:$0xff] }
 0x1cd   : > { %6874 = vmatprep.mubr.msk.bf16.mxu0 %vm351_vm1, %v4454_v38  ;;  %v5653_v38 = vld [vmem:[%s7583_s5 + $0xfe] sm:$0xff] }
 0x1ce   : > { %v2339_v34 = vpack.c.bf16 %v5653_v38, %v5652_v32 }
 0x1d3   : > { %6603 = vmatmul.mubr.msk.bf16.gmra.mrb[28].mxu1 %vm351_vm1, %v2039_v3  ;;  %v4755_v3 = vpack.c.bf16 %v6069_v44, %v6068_v31 }
 0x1d4   : > { %6875 = vmatmul.mubr.msk.bf16.gmra.mrb[28].mxu0 %vm351_vm1, %v4455_v51  ;;  %6608 = vmatprep.mubr.msk.bf16.mxu1 %vm351_vm1, %v2326_v8  ;;  %v2340_v51 = vpack.c.bf16 %v5655_v27, %v5654_v52  ;;  %v4756_v8 = vpack.c.bf16 %v6071_v10, %v6070_v7 }
 0x1d5   : > { %6880 = vmatprep.mubr.msk.bf16.mxu0 %vm351_vm1, %v4742_v23  ;;  %v5656_v23 = vld [vmem:[%s7583_s5 + $0x116] sm:$0xff]  ;;  %s5294_s5 = sshll.u32 %s236_s20, 3 }
 0x1d6   : > { %v2341_v59 = vpack.c.bf16 %v5657_v0, %v5656_v23  ;;  %s8846_s23 = scalar_lea.vmem %s8961_s3, %s5294_s5 }
 0x1db   : > { %6609 = vmatmul.mubr.msk.bf16.vlgmr.msra.gmra.mrb[0].mxu1 %vm351_vm1, %v2327_v29  ;;  %v4757_v29 = vpack.c.bf16 %v6073_v21, %v6072_v60 }
 0x1dc   : > { %6881 = vmatmul.mubr.msk.bf16.vlgmr.msra.gmra.mrb[0].mxu0 %vm351_vm1, %v4743_v28  ;;  %6612 = vmatprep.mubr.msk.bf16.mxu1 %vm351_vm1, %v2328_v4 }
 0x1dd   : > { %6884 = vmatprep.mubr.msk.bf16.mxu0 %vm351_vm1, %v4744_v1  ;;  %v8840_v1 = vld [vmem:[%s8960_s2] ss:$0 sm:$0xff] }
 0x1e3   : > { %6613 = vmatmul.mubr.msk.bf16.gmra.mrb[4].mxu1 %vm351_vm1, %v2329_v37 }
 0x1e4   : > { %6885 = vmatmul.mubr.msk.bf16.gmra.mrb[4].mxu0 %vm351_vm1, %v4745_v43  ;;  %6616 = vmatprep.mubr.msk.bf16.mxu1 %vm351_vm1, %v2330_v17 }
 0x1e5   : > { %6888 = vmatprep.mubr.msk.bf16.mxu0 %vm351_vm1, %v4746_v55 }
 0x1eb   : > { %6617 = vmatmul.mubr.msk.bf16.gmra.mrb[8].mxu1 %vm351_vm1, %v2331_v19 }
 0x1ec   : > { %6889 = vmatmul.mubr.msk.bf16.gmra.mrb[8].mxu0 %vm351_vm1, %v4747_v11  ;;  %6620 = vmatprep.mubr.msk.bf16.mxu1 %vm351_vm1, %v2332_v46 }
 0x1ed   : > { %6892 = vmatprep.mubr.msk.bf16.mxu0 %vm351_vm1, %v4748_v39 }
 0x1f3   : > { %6621 = vmatmul.mubr.msk.bf16.gmra.mrb[12].mxu1 %vm351_vm1, %v2333_v6 }
 0x1f4   : > { %6893 = vmatmul.mubr.msk.bf16.gmra.mrb[12].mxu0 %vm351_vm1, %v4749_v9  ;;  %6624 = vmatprep.mubr.msk.bf16.mxu1 %vm351_vm1, %v2334_v36 }
 0x1f5   : > { %6896 = vmatprep.mubr.msk.bf16.mxu0 %vm351_vm1, %v4750_v62 }
 0x1fb   : > { %6625 = vmatmul.mubr.msk.bf16.gmra.mrb[16].mxu1 %vm351_vm1, %v2335_v53 }
 0x1fc   : > { %6897 = vmatmul.mubr.msk.bf16.gmra.mrb[16].mxu0 %vm351_vm1, %v4751_v15  ;;  %6628 = vmatprep.mubr.msk.bf16.mxu1 %vm351_vm1, %v2336_v18 }
 0x1fd   : > { %6900 = vmatprep.mubr.msk.bf16.mxu0 %vm351_vm1, %v4752_v50 }
 0x203   : > { %6629 = vmatmul.mubr.msk.bf16.gmra.mrb[20].mxu1 %vm351_vm1, %v2337_v58 }
 0x204   : > { %6901 = vmatmul.mubr.msk.bf16.gmra.mrb[20].mxu0 %vm351_vm1, %v4753_v13  ;;  %6632 = vmatprep.mubr.msk.bf16.mxu1 %vm351_vm1, %v2338_v48 }
 0x205   : > { %6904 = vmatprep.mubr.msk.bf16.mxu0 %vm351_vm1, %v4754_v61 }
 0x20b   : > { %6633 = vmatmul.mubr.msk.bf16.gmra.mrb[24].mxu1 %vm351_vm1, %v2339_v34 }
 0x20c   : > { %6905 = vmatmul.mubr.msk.bf16.gmra.mrb[24].mxu0 %vm351_vm1, %v4755_v3  ;;  %6636 = vmatprep.mubr.msk.bf16.mxu1 %vm351_vm1, %v2340_v51 }
 0x20d   : > { %6908 = vmatprep.mubr.msk.bf16.mxu0 %vm351_vm1, %v4756_v8 }
 0x213   : > { %6637 = vmatmul.mubr.msk.bf16.gmra.mrb[28].mxu1 %vm351_vm1, %v2341_v59 }
 0x214   : > { %6909 = vmatmul.mubr.msk.bf16.gmra.mrb[28].mxu0 %vm351_vm1, %v4757_v29 }
 0x2ae   : > { %v6610_v28 = vpop.f32.mrb[0].mxu1 }
 0x2af   : > { %v6882_v4 = vpop.f32.mrb[0].mxu0  ;;  %v2435_v45 = vpop.f32.mrb[1].mxu1 }
 0x2b0   : > { %v6912_v41 = vadd.f32 %v6882_v4, %v6610_v28  ;;  %v4851_v5 = vpop.f32.mrb[1].mxu0  ;;  %v6611_v12 = vpop.f32.mrb[2].mxu1 }
 0x2b1   : > { %v6913_v37 = vadd.f32 %v4851_v5, %v2435_v45  ;;  %v6883_v43 = vpop.f32.mrb[2].mxu0  ;;  %v2438_v17 = vpop.f32.mrb[3].mxu1 }
 0x2b2   : > { %v5019_v55 = vadd.f32 %v6912_v41, %v8840_v1  ;;  %v6914_v24 = vadd.f32 %v6883_v43, %v6611_v12  ;;  %v4854_v30 = vpop.f32.mrb[3].mxu0 }
 0x2b3   : > { %v5017_v16 = vadd.f32 %v6913_v37, %v8840_v1  ;;  %v6915_v25 = vadd.f32 %v4854_v30, %v2438_v17 }
 0x2b4   : > { %v5051_v19 = vmax.f32 %v5019_v55, 0.0  ;;  %v5020_v11 = vadd.f32 %v6914_v24, %v8840_v1 }
 0x2b5   : > { %v5049_v46 = vmax.f32 %v5017_v16, 0.0  ;;  %v5018_v39 = vadd.f32 %v6915_v25, %v8840_v1 }
 0x2b6   : > { %5084 = vst.msk [vmem:[%s8846_s23 + $0x10] sm:$0xff] %vm5081_vm2, %v5051_v19  ;;  %v5052_v54 = vmax.f32 %v5020_v11, 0.0  ;;  %v6614_v63 = vpop.f32.mrb[4].mxu1 }
 0x2b7   : > { %5082 = vst.msk [vmem:[%s8846_s23] sm:$0xff] %vm5081_vm2, %v5049_v46  ;;  %v5050_v20 = vmax.f32 %v5018_v39, 0.0  ;;  %v6886_v40 = vpop.f32.mrb[4].mxu0  ;;  %v2451_v6 = vpop.f32.mrb[5].mxu1 }
 0x2b8   : > { %5085 = vst.msk [vmem:[%s8846_s23 + $0x18] sm:$0xff] %vm5081_vm2, %v5052_v54  ;;  %v6916_v9 = vadd.f32 %v6886_v40, %v6614_v63  ;;  %v4867_v36 = vpop.f32.mrb[5].mxu0  ;;  %v6615_v62 = vpop.f32.mrb[6].mxu1 }
 0x2b9   : > { %5083 = vst.msk [vmem:[%s8846_s23 + $0x8] sm:$0xff] %vm5081_vm2, %v5050_v20  ;;  %v6917_v47 = vadd.f32 %v4867_v36, %v2451_v6  ;;  %v6887_v14 = vpop.f32.mrb[6].mxu0  ;;  %v2454_v2 = vpop.f32.mrb[7].mxu1 }
 0x2ba   : > { %v5023_v42 = vadd.f32 %v6916_v9, %v8840_v1  ;;  %v6918_v53 = vadd.f32 %v6887_v14, %v6615_v62  ;;  %v4870_v15 = vpop.f32.mrb[7].mxu0 }
 0x2bb   : > { %v5021_v18 = vadd.f32 %v6917_v47, %v8840_v1  ;;  %v6919_v50 = vadd.f32 %v4870_v15, %v2454_v2 }
 0x2bc   : > { %v5055_v49 = vmax.f32 %v5023_v42, 0.0  ;;  %v5024_v57 = vadd.f32 %v6918_v53, %v8840_v1 }
 0x2bd   : > { %v5053_v26 = vmax.f32 %v5021_v18, 0.0  ;;  %v5022_v33 = vadd.f32 %v6919_v50, %v8840_v1 }
 0x2be   : > { %5088 = vst.msk [vmem:[%s8846_s23 + $0x30] sm:$0xff] %vm5081_vm2, %v5055_v49  ;;  %v5056_v22 = vmax.f32 %v5024_v57, 0.0  ;;  %v6618_v56 = vpop.f32.mrb[8].mxu1 }
 0x2bf   : > { %5086 = vst.msk [vmem:[%s8846_s23 + $0x20] sm:$0xff] %vm5081_vm2, %v5053_v26  ;;  %v5054_v35 = vmax.f32 %v5022_v33, 0.0  ;;  %v6890_v58 = vpop.f32.mrb[8].mxu0  ;;  %v2467_v13 = vpop.f32.mrb[9].mxu1 }
 0x2c0   : > { %5089 = vst.msk [vmem:[%s8846_s23 + $0x38] sm:$0xff] %vm5081_vm2, %v5056_v22  ;;  %v6920_v48 = vadd.f32 %v6890_v58, %v6618_v56  ;;  %v4883_v61 = vpop.f32.mrb[9].mxu0  ;;  %v6619_v32 = vpop.f32.mrb[10].mxu1 }
 0x2c1   : > { %5087 = vst.msk [vmem:[%s8846_s23 + $0x28] sm:$0xff] %vm5081_vm2, %v5054_v35  ;;  %v6921_v38 = vadd.f32 %v4883_v61, %v2467_v13  ;;  %v6891_v31 = vpop.f32.mrb[10].mxu0  ;;  %v2470_v44 = vpop.f32.mrb[11].mxu1 }
 0x2c2   : > { %v5027_v52 = vadd.f32 %v6920_v48, %v8840_v1  ;;  %v6922_v27 = vadd.f32 %v6891_v31, %v6619_v32  ;;  %v4886_v7 = vpop.f32.mrb[11].mxu0 }
 0x2c3   : > { %v5025_v10 = vadd.f32 %v6921_v38, %v8840_v1  ;;  %v6923_v34 = vadd.f32 %v4886_v7, %v2470_v44 }
 0x2c4   : > { %v5059_v3 = vmax.f32 %v5027_v52, 0.0  ;;  %v5028_v51 = vadd.f32 %v6922_v27, %v8840_v1 }
 0x2c5   : > { %v5057_v8 = vmax.f32 %v5025_v10, 0.0  ;;  %v5026_v23 = vadd.f32 %v6923_v34, %v8840_v1 }
 0x2c6   : > { %5092 = vst.msk [vmem:[%s8846_s23 + $0x50] sm:$0xff] %vm5081_vm2, %v5059_v3  ;;  %v5060_v0 = vmax.f32 %v5028_v51, 0.0  ;;  %v6622_v60 = vpop.f32.mrb[12].mxu1 }
 0x2c7   : > { %5090 = vst.msk [vmem:[%s8846_s23 + $0x40] sm:$0xff] %vm5081_vm2, %v5057_v8  ;;  %v5058_v21 = vmax.f32 %v5026_v23, 0.0  ;;  %v6894_v59 = vpop.f32.mrb[12].mxu0  ;;  %v2483_v29 = vpop.f32.mrb[13].mxu1 }
 0x2c8   : > { %5093 = vst.msk [vmem:[%s8846_s23 + $0x58] sm:$0xff] %vm5081_vm2, %v5060_v0  ;;  %v6924_v28 = vadd.f32 %v6894_v59, %v6622_v60  ;;  %v4899_v4 = vpop.f32.mrb[13].mxu0  ;;  %v6623_v45 = vpop.f32.mrb[14].mxu1 }
 0x2c9   : > { %5091 = vst.msk [vmem:[%s8846_s23 + $0x48] sm:$0xff] %vm5081_vm2, %v5058_v21  ;;  %v6925_v41 = vadd.f32 %v4899_v4, %v2483_v29  ;;  %v6895_v5 = vpop.f32.mrb[14].mxu0  ;;  %v2486_v12 = vpop.f32.mrb[15].mxu1 }
 0x2ca   : > { %v5031_v37 = vadd.f32 %v6924_v28, %v8840_v1  ;;  %v6926_v43 = vadd.f32 %v6895_v5, %v6623_v45  ;;  %v4902_v17 = vpop.f32.mrb[15].mxu0 }
 0x2cb   : > { %v5029_v55 = vadd.f32 %v6925_v41, %v8840_v1  ;;  %v6927_v24 = vadd.f32 %v4902_v17, %v2486_v12 }
 0x2cc   : > { %v5063_v30 = vmax.f32 %v5031_v37, 0.0  ;;  %v5032_v16 = vadd.f32 %v6926_v43, %v8840_v1 }
 0x2cd   : > { %v5061_v25 = vmax.f32 %v5029_v55, 0.0  ;;  %v5030_v19 = vadd.f32 %v6927_v24, %v8840_v1 }
 0x2ce   : > { %5096 = vst.msk [vmem:[%s8846_s23 + $0x70] sm:$0xff] %vm5081_vm2, %v5063_v30  ;;  %v5064_v11 = vmax.f32 %v5032_v16, 0.0  ;;  %v6626_v46 = vpop.f32.mrb[16].mxu1 }
 0x2cf   : > { %5094 = vst.msk [vmem:[%s8846_s23 + $0x60] sm:$0xff] %vm5081_vm2, %v5061_v25  ;;  %v5062_v39 = vmax.f32 %v5030_v19, 0.0  ;;  %v6898_v54 = vpop.f32.mrb[16].mxu0  ;;  %v2499_v63 = vpop.f32.mrb[17].mxu1 }
 0x2d0   : > { %5097 = vst.msk [vmem:[%s8846_s23 + $0x78] sm:$0xff] %vm5081_vm2, %v5064_v11  ;;  %v6928_v20 = vadd.f32 %v6898_v54, %v6626_v46  ;;  %v4915_v40 = vpop.f32.mrb[17].mxu0  ;;  %v6627_v6 = vpop.f32.mrb[18].mxu1 }
 0x2d1   : > { %5095 = vst.msk [vmem:[%s8846_s23 + $0x68] sm:$0xff] %vm5081_vm2, %v5062_v39  ;;  %v6929_v9 = vadd.f32 %v4915_v40, %v2499_v63  ;;  %v6899_v36 = vpop.f32.mrb[18].mxu0  ;;  %v2502_v62 = vpop.f32.mrb[19].mxu1 }
 0x2d2   : > { %v5035_v47 = vadd.f32 %v6928_v20, %v8840_v1  ;;  %v6930_v14 = vadd.f32 %v6899_v36, %v6627_v6  ;;  %v4918_v2 = vpop.f32.mrb[19].mxu0 }
 0x2d3   : > { %v5033_v42 = vadd.f32 %v6929_v9, %v8840_v1  ;;  %v6931_v53 = vadd.f32 %v4918_v2, %v2502_v62 }
 0x2d4   : > { %v5067_v15 = vmax.f32 %v5035_v47, 0.0  ;;  %v5036_v18 = vadd.f32 %v6930_v14, %v8840_v1 }
 0x2d5   : > { %v5065_v50 = vmax.f32 %v5033_v42, 0.0  ;;  %v5034_v49 = vadd.f32 %v6931_v53, %v8840_v1 }
 0x2d6   : > { %5100 = vst.msk [vmem:[%s8846_s23 + $0x90] sm:$0xff] %vm5081_vm2, %v5067_v15  ;;  %v5068_v57 = vmax.f32 %v5036_v18, 0.0  ;;  %v6630_v26 = vpop.f32.mrb[20].mxu1 }
 0x2d7   : > { %5098 = vst.msk [vmem:[%s8846_s23 + $0x80] sm:$0xff] %vm5081_vm2, %v5065_v50  ;;  %v5066_v33 = vmax.f32 %v5034_v49, 0.0  ;;  %v6902_v22 = vpop.f32.mrb[20].mxu0  ;;  %v2515_v56 = vpop.f32.mrb[21].mxu1 }
 0x2d8   : > { %5101 = vst.msk [vmem:[%s8846_s23 + $0x98] sm:$0xff] %vm5081_vm2, %v5068_v57  ;;  %v6932_v35 = vadd.f32 %v6902_v22, %v6630_v26  ;;  %v4931_v58 = vpop.f32.mrb[21].mxu0  ;;  %v6631_v13 = vpop.f32.mrb[22].mxu1 }
 0x2d9   : > { %5099 = vst.msk [vmem:[%s8846_s23 + $0x88] sm:$0xff] %vm5081_vm2, %v5066_v33  ;;  %v6933_v48 = vadd.f32 %v4931_v58, %v2515_v56  ;;  %v6903_v61 = vpop.f32.mrb[22].mxu0  ;;  %v2518_v32 = vpop.f32.mrb[23].mxu1 }
 0x2da   : > { %v5039_v38 = vadd.f32 %v6932_v35, %v8840_v1  ;;  %v6934_v31 = vadd.f32 %v6903_v61, %v6631_v13  ;;  %v4934_v44 = vpop.f32.mrb[23].mxu0 }
 0x2db   : > { %v5037_v52 = vadd.f32 %v6933_v48, %v8840_v1  ;;  %v6935_v27 = vadd.f32 %v4934_v44, %v2518_v32 }
 0x2dc   : > { %v5071_v7 = vmax.f32 %v5039_v38, 0.0  ;;  %v5040_v10 = vadd.f32 %v6934_v31, %v8840_v1 }
 0x2dd   : > { %v5069_v34 = vmax.f32 %v5037_v52, 0.0  ;;  %v5038_v3 = vadd.f32 %v6935_v27, %v8840_v1 }
 0x2de   : > { %5104 = vst.msk [vmem:[%s8846_s23 + $0xb0] sm:$0xff] %vm5081_vm2, %v5071_v7  ;;  %v5072_v51 = vmax.f32 %v5040_v10, 0.0  ;;  %v6634_v8 = vpop.f32.mrb[24].mxu1 }
 0x2df   : > { %5102 = vst.msk [vmem:[%s8846_s23 + $0xa0] sm:$0xff] %vm5081_vm2, %v5069_v34  ;;  %v5070_v23 = vmax.f32 %v5038_v3, 0.0  ;;  %v6906_v0 = vpop.f32.mrb[24].mxu0  ;;  %v2531_v60 = vpop.f32.mrb[25].mxu1 }
 0x2e0   : > { %5105 = vst.msk [vmem:[%s8846_s23 + $0xb8] sm:$0xff] %vm5081_vm2, %v5072_v51  ;;  %v6936_v21 = vadd.f32 %v6906_v0, %v6634_v8  ;;  %v4947_v59 = vpop.f32.mrb[25].mxu0  ;;  %v6635_v29 = vpop.f32.mrb[26].mxu1 }
 0x2e1   : > { %5103 = vst.msk [vmem:[%s8846_s23 + $0xa8] sm:$0xff] %vm5081_vm2, %v5070_v23  ;;  %v6937_v28 = vadd.f32 %v4947_v59, %v2531_v60  ;;  %v6907_v4 = vpop.f32.mrb[26].mxu0  ;;  %v2534_v45 = vpop.f32.mrb[27].mxu1 }
 0x2e2   : > { %v5043_v41 = vadd.f32 %v6936_v21, %v8840_v1  ;;  %v6938_v5 = vadd.f32 %v6907_v4, %v6635_v29  ;;  %v4950_v12 = vpop.f32.mrb[27].mxu0 }
 0x2e3   : > { %v5041_v37 = vadd.f32 %v6937_v28, %v8840_v1  ;;  %v6939_v43 = vadd.f32 %v4950_v12, %v2534_v45 }
 0x2e4   : > { %v5075_v17 = vmax.f32 %v5043_v41, 0.0  ;;  %v5044_v55 = vadd.f32 %v6938_v5, %v8840_v1 }
 0x2e5   : > { %v5073_v24 = vmax.f32 %v5041_v37, 0.0  ;;  %v5042_v30 = vadd.f32 %v6939_v43, %v8840_v1 }
 0x2e6   : > { %5108 = vst.msk [vmem:[%s8846_s23 + $0xd0] sm:$0xff] %vm5081_vm2, %v5075_v17  ;;  %v5076_v16 = vmax.f32 %v5044_v55, 0.0  ;;  %v6638_v25 = vpop.f32.mrb[28].mxu1 }
 0x2e7   : > { %5106 = vst.msk [vmem:[%s8846_s23 + $0xc0] sm:$0xff] %vm5081_vm2, %v5073_v24  ;;  %v5074_v19 = vmax.f32 %v5042_v30, 0.0  ;;  %v6910_v11 = vpop.f32.mrb[28].mxu0  ;;  %v2547_v46 = vpop.f32.mrb[29].mxu1 }
 0x2e8   : > { %5109 = vst.msk [vmem:[%s8846_s23 + $0xd8] sm:$0xff] %vm5081_vm2, %v5076_v16  ;;  %v6940_v39 = vadd.f32 %v6910_v11, %v6638_v25  ;;  %v4963_v54 = vpop.f32.mrb[29].mxu0  ;;  %v6639_v63 = vpop.f32.mrb[30].mxu1 }
 0x2e9   : > { %5107 = vst.msk [vmem:[%s8846_s23 + $0xc8] sm:$0xff] %vm5081_vm2, %v5074_v19  ;;  %v6941_v20 = vadd.f32 %v4963_v54, %v2547_v46  ;;  %v6911_v40 = vpop.f32.mrb[30].mxu0  ;;  %v2550_v6 = vpop.f32.mrb[31].mxu1 }
 0x2ea   : > { %v5047_v9 = vadd.f32 %v6940_v39, %v8840_v1  ;;  %v6942_v36 = vadd.f32 %v6911_v40, %v6639_v63  ;;  %v4966_v62 = vpop.f32.mrb[31].mxu0 }
 0x2eb   : > { %v5045_v47 = vadd.f32 %v6941_v20, %v8840_v1  ;;  %v6943_v14 = vadd.f32 %v4966_v62, %v2550_v6 }
 0x2ec   : > { %v5079_v2 = vmax.f32 %v5047_v9, 0.0  ;;  %v5048_v42 = vadd.f32 %v6942_v36, %v8840_v1 }
 0x2ed   : > { %v5077_v53 = vmax.f32 %v5045_v47, 0.0  ;;  %v5046_v15 = vadd.f32 %v6943_v14, %v8840_v1 }
 0x2ee   : > { %5112 = vst.msk [vmem:[%s8846_s23 + $0xf0] sm:$0xff] %vm5081_vm2, %v5079_v2  ;;  %v5080_v18 = vmax.f32 %v5048_v42, 0.0 }
 0x2ef   : > { %5110 = vst.msk [vmem:[%s8846_s23 + $0xe0] sm:$0xff] %vm5081_vm2, %v5077_v53  ;;  %v5078_v50 = vmax.f32 %v5046_v15, 0.0 }
 0x2f0   : > { %5113 = vst.msk [vmem:[%s8846_s23 + $0xf8] sm:$0xff] %vm5081_vm2, %v5080_v18 }
 0x2f1   : > { %5111 = vst.msk [vmem:[%s8846_s23 + $0xe8] sm:$0xff] %vm5081_vm2, %v5078_v50 }
 0x2f2 PF: > { %s13_s16 = sadd.s32 1, %s7504_s16   ;;  %s8992_s12 = smov %s7496_s14 }
 0x2f3   : > { %p10_p7 = scmp.ge.s32.totalorder %s13_s16, 12   ;;  %s8993_s13 = smov %s7500_s15 }
 0x2f4   : > { %s8994_s14 = smov %s8997_s17  ;;  %s8995_s15 = smov %s9001_s18 }
 0x2f5   :  { %12 = sbr.rel (!%p10_p7) target bundleno = 3 (0x3), region = 99 }

</bundles_post_ra>
